<compile_context>
chip_gen: v7x
topology: tpu7x:2x2x1
jax: 0.10.0
libtpu: 0.0.40
codegen_flags: <defaults>
</compile_context>

<pallas_src>
import functools

import jax
import jax.numpy as jnp
from jax.experimental import pallas as pl
from jax.experimental.pallas import tpu as pltpu


# ----------------------------------------------------------------------------
# Kernel: Nb batch elements per grid step, one MXU matmul per step.
#   Layouts (lane-dense; W and C packed together on the 128-lane axis):
#     x_ref    : (Nb, s*s, Hph, Wph*Cin)  polyphase-split, spatially padded input
#     wdw_ref  : (9, Wo*Cin)              depthwise taps, BN1 scale folded, W-tiled
#     wpw_ref  : (Wo*Cin, Wo*Cout)        block-diag 1x1 weights, BN2 scale folded
#     bias_ref : (1, Wo*Cout)             BN1 shift pushed through 1x1 + BN2 shift
#     o_ref    : (Nb, Ho, Wo*Cout)        lane-dense output slab (unmasked stores)
# ----------------------------------------------------------------------------
def _basic_block_kernel(x_ref, wdw_ref, wpw_ref, bias_ref, o_ref, *,
                        Nb, stride, Ho, Wo, Cin):
    K = Wo * Cin
    wpw = wpw_ref[...]                                   # resident (Buffered(1))
    bias = bias_ref[...]                                 # (1, Wo*Cout), f32

    # Depthwise 3x3 (+ folded BN1 scale): nine FMAs over the whole
    # (Nb, Ho, Wo*Cin) slab.  Shifted windows are sublane-offset row loads from
    # the ref; the kw shift is a small static lane-window slice.
    acc = jnp.zeros((Nb, Ho, K), x_ref.dtype)
    row_cache = {}                                       # dedup identical row loads
    for kh in range(3):
        for kw in range(3):
            ph = (kh % stride) * stride + (kw % stride)  # polyphase index
            oh = kh // stride
            ow = kw // stride
            if (ph, oh) not in row_cache:
                row_cache[(ph, oh)] = x_ref[:, ph, oh:oh + Ho, :]   # (Nb,Ho,Wph*Cin)
            rows = row_cache[(ph, oh)]
            patch = rows[..., ow * Cin:(ow + Wo) * Cin]             # (Nb,Ho,Wo*Cin)
            t = kh * 3 + kw
            acc = acc + patch * wdw_ref[t:t + 1, :]                 # bcast (1,K)

    # 1x1 conv + BN2 as ONE matmul against the block-diagonal weight:
    # (Nb*Ho, Wo*Cin) @ (Wo*Cin, Wo*Cout) -> (Nb*Ho, Wo*Cout).  M = Nb*Ho.
    # (Default MXU precision matched the f32 reference at 1e-4 here because the
    #  effective contraction depth per output is only Cin; for larger channel
    #  counts use precision=jax.lax.Precision.HIGHEST.)
    acc2 = acc.reshape(Nb * Ho, K)                       # sublane-aligned merge
    out = jnp.dot(acc2, wpw, preferred_element_type=jnp.float32) + bias
    o_ref[...] = out.reshape(Nb, Ho, -1).astype(o_ref.dtype)


def _pick_batch_block(N, Ho):
    """Pick Nb: fill the MXU (Nb*Ho >= 128) but keep >=2 grid steps if possible."""
    divisors = [d for d in range(1, N + 1) if N % d == 0]
    for d in divisors:                                   # smallest Nb with M >= 128
        if d * Ho >= 128 and (N // d >= 2 or d == N):
            return d
    cands = [d for d in divisors if N // d >= 2]         # else keep 2 TCs busy (v7x)
    return max(cands) if cands else N


# ----------------------------------------------------------------------------
# Core NHWC path: pad (+ polyphase split only if stride>1), fold BN, pallas_call.
# Returns the lane-dense (N, Ho, Wo*Cout) slab.
# ----------------------------------------------------------------------------
def _basic_block_nhwc(x_nhwc, params, *, stride, eps, batch_block, compute_dtype):
    N, H, W, Cin = x_nhwc.shape
    Cout = params["w_pw"].shape[0]
    s = int(stride)
    Ho = (H + 2 - 3) // s + 1
    Wo = (W + 2 - 3) // s + 1
    off = (3 - 1) // s                       # max tap offset inside one phase
    Hph, Wph = Ho + off, Wo + off
    Nb = int(batch_block) if batch_block is not None else _pick_batch_block(N, Ho)
    assert N % Nb == 0, (N, Nb)

    # --- activations: pad, (polyphase split only for stride>1), pack W*C -----
    pad_b = s * Hph - (H + 1)                # >= the conv's bottom pad of 1
    pad_r = s * Wph - (W + 1)
    xp = jnp.pad(x_nhwc.astype(compute_dtype),
                 ((0, 0), (1, pad_b), (1, pad_r), (0, 0)))
    if s == 1:
        x_ph = xp.reshape(N, 1, Hph, Wph * Cin)              # free reshape
    else:
        xp = xp.reshape(N, Hph, s, Wph, s, Cin)
        xp = jnp.transpose(xp, (0, 2, 4, 1, 3, 5))           # (N,s,s,Hph,Wph,Cin)
        x_ph = xp.reshape(N, s * s, Hph, Wph * Cin)

    # --- fold inference BN running stats into weights / one output bias ------
    def fold(g, b, m, v):
        sc = (g / jnp.sqrt(v + eps)).astype(jnp.float32)
        return sc, (b - m * sc).astype(jnp.float32)

    s1, b1 = fold(params["bn1_gamma"], params["bn1_beta"],
                  params["bn1_mean"], params["bn1_var"])
    s2, b2 = fold(params["bn2_gamma"], params["bn2_beta"],
                  params["bn2_mean"], params["bn2_var"])

    # depthwise weight: torch (Cin,1,3,3) -> (3,3,Cin), BN1 scale folded,
    # tiled over the Wo output columns -> (9, Wo*Cin)
    w_dw = jnp.transpose(params["w_dw"][:, 0, :, :], (1, 2, 0)).astype(jnp.float32)
    w_dw = (w_dw * s1[None, None, :]).reshape(9, Cin)
    w_dw_t = jnp.tile(w_dw, (1, Wo)).astype(compute_dtype)         # (9, Wo*Cin)

    # pointwise weight: torch (Cout,Cin,1,1) -> (Cin,Cout), BN2 scale folded,
    # block-diagonal over the Wo output columns -> (Wo*Cin, Wo*Cout)
    w_pw = jnp.transpose(params["w_pw"][:, :, 0, 0], (1, 0)).astype(jnp.float32)
    w_pw = w_pw * s2[None, :]
    w_big = jnp.kron(jnp.eye(Wo, dtype=jnp.float32), w_pw).astype(compute_dtype)

    # bias: BN1 shift pushed through the (BN2-scaled) 1x1 conv + BN2 shift
    bias = b2 + b1 @ w_pw                                          # (Cout,)
    bias_t = jnp.tile(bias, (Wo,))[None, :].astype(jnp.float32)    # (1, Wo*Cout)

    kernel = functools.partial(_basic_block_kernel, Nb=Nb, stride=s,
                               Ho=Ho, Wo=Wo, Cin=Cin)

    # --- VMEM budget: 2x activation/out blocks + 1x resident weights + temps,
    #     capped per TPU generation (leave compiler-scratch headroom) ---------
    act_bytes = 2 if compute_dtype == jnp.bfloat16 else 4
    x_blk = Nb * s * s * Hph * Wph * Cin * act_bytes
    o_blk = Nb * Ho * Wo * Cout * 4
    w_res = (9 * Wo * Cin + Wo * Cin * Wo * Cout) * act_bytes + Wo * Cout * 4
    tmps = Nb * Ho * (4 * Wph * Cin + 2 * Wo * Cin) * act_bytes + 2 * o_blk
    vmem_est = 2 * x_blk + 2 * o_blk + w_res + tmps
    try:
        vmem_cap = int(pltpu.get_tpu_info().vmem_capacity_bytes)
    except Exception:                              # conservative fallback
        vmem_cap = 64 << 20
    cap = (vmem_cap * 3) // 4                      # ~96 MiB v5e/v6e, ~48 MiB v7x
    vmem_limit = int(min(max(2 * vmem_est, 16 << 20), cap))

    out_packed = pl.pallas_call(
        kernel,
        out_shape=jax.ShapeDtypeStruct((N, Ho, Wo * Cout), jnp.float32),
        grid_spec=pltpu.PrefetchScalarGridSpec(
            num_scalar_prefetch=0,
            grid=(N // Nb,),
            in_specs=[
                pl.BlockSpec((Nb, s * s, Hph, Wph * Cin), lambda n: (n, 0, 0, 0)),
                # grid-invariant weights: single-buffered, DMA'd once
                pl.BlockSpec((9, Wo * Cin), lambda n: (0, 0),
                             pipeline_mode=pl.Buffered(1)),
                pl.BlockSpec((Wo * Cin, Wo * Cout), lambda n: (0, 0),
                             pipeline_mode=pl.Buffered(1)),
                pl.BlockSpec((1, Wo * Cout), lambda n: (0, 0),
                             pipeline_mode=pl.Buffered(1)),
            ],
            out_specs=pl.BlockSpec((Nb, Ho, Wo * Cout), lambda n: (n, 0, 0)),
        ),
        compiler_params=pltpu.CompilerParams(
            dimension_semantics=("parallel",),
            vmem_limit_bytes=vmem_limit),
    )(x_ph, w_dw_t, w_big, bias_t)
    return out_packed                              # (N, Ho, Wo*Cout)


# ----------------------------------------------------------------------------
# Public NCHW entry point (PyTorch I/O parity).  jit so pad/transpose glue
# around the pallas_call fuses into single HBM passes.
# ----------------------------------------------------------------------------
@functools.partial(jax.jit,
                   static_argnames=("stride", "batch_block", "compute_dtype"))
def basic_block_forward(x_nchw, params, stride=1, eps=1e-5, batch_block=None,
                        compute_dtype=jnp.float32):
    N, Cin, H, W = x_nchw.shape
    Cout = params["w_pw"].shape[0]
    x_nhwc = jnp.transpose(x_nchw, (0, 2, 3, 1))
    out_packed = _basic_block_nhwc(x_nhwc, params, stride=stride, eps=eps,
                                   batch_block=batch_block,
                                   compute_dtype=compute_dtype)
    Ho, wo_cout = out_packed.shape[1], out_packed.shape[2]
    out = out_packed.reshape(N, Ho, wo_cout // Cout, Cout)
    return jnp.transpose(out, (0, 3, 1, 2))        # back to NCHW


# ----------------------------------------------------------------------------
# Pure-JAX reference (matches PyTorch eval-mode BasicBlock semantics).
# ----------------------------------------------------------------------------
def basic_block_reference(x_nchw, params, stride=1, eps=1e-5):
    Cin = x_nchw.shape[1]
    dn = ("NCHW", "OIHW", "NCHW")
    out = jax.lax.conv_general_dilated(
        x_nchw, params["w_dw"], window_strides=(stride, stride),
        padding=((1, 1), (1, 1)), feature_group_count=Cin,
        dimension_numbers=dn)

    def bn(x, g, b, m, v):
        return (x - m[None, :, None, None]) / jnp.sqrt(v[None, :, None, None] + eps) \
               * g[None, :, None, None] + b[None, :, None, None]

    out = bn(out, params["bn1_gamma"], params["bn1_beta"],
             params["bn1_mean"], params["bn1_var"])
    out = jax.lax.conv_general_dilated(
        out, params["w_pw"], window_strides=(1, 1), padding=((0, 0), (0, 0)),
        dimension_numbers=dn)
    out = bn(out, params["bn2_gamma"], params["bn2_beta"],
             params["bn2_mean"], params["bn2_var"])
    return out


if __name__ == "__main__":
    # Small shapes consistent with the module: batch=4, inplanes=8, planes=16,
    # spatial 16x16 (batch 4 exercises the batched-slab matmul path, Nb=2).
    N, INPLANES, PLANES, H, W = 4, 8, 16, 16, 16

    key = jax.random.PRNGKey(0)
    ks = jax.random.split(key, 10)

    params = {
        # conv1: depthwise 3x3, groups=inplanes -> weight (inplanes, 1, 3, 3)
        "w_dw": jax.random.normal(ks[0], (INPLANES, 1, 3, 3), jnp.float32) * 0.2,
        # conv2: 1x1, inplanes -> planes -> weight (planes, inplanes, 1, 1)
        "w_pw": jax.random.normal(ks[1], (PLANES, INPLANES, 1, 1), jnp.float32) * 0.2,
        # BN1 over inplanes channels (inference / running stats)
        "bn1_gamma": jax.random.normal(ks[2], (INPLANES,), jnp.float32) * 0.1 + 1.0,
        "bn1_beta": jax.random.normal(ks[3], (INPLANES,), jnp.float32) * 0.1,
        "bn1_mean": jax.random.normal(ks[4], (INPLANES,), jnp.float32) * 0.1,
        "bn1_var": jnp.abs(jax.random.normal(ks[5], (INPLANES,), jnp.float32)) * 0.1 + 0.5,
        # BN2 over planes channels
        "bn2_gamma": jax.random.normal(ks[6], (PLANES,), jnp.float32) * 0.1 + 1.0,
        "bn2_beta": jax.random.normal(ks[7], (PLANES,), jnp.float32) * 0.1,
        "bn2_mean": jnp.zeros((PLANES,), jnp.float32),
        "bn2_var": jnp.abs(jax.random.normal(ks[8], (PLANES,), jnp.float32)) * 0.1 + 0.5,
    }

    x = jax.random.normal(ks[9], (N, INPLANES, H, W), jnp.float32)

    for stride in (1, 2):
        ref = jax.block_until_ready(basic_block_reference(x, params, stride=stride))

        # f32 path: must match the f32 reference tightly.
        out = jax.block_until_ready(basic_block_forward(x, params, stride=stride))
        assert out.shape == ref.shape, (stride, out.shape, ref.shape)
        err = float(jnp.max(jnp.abs(out - ref)))
        assert jnp.allclose(out, ref, atol=1e-4, rtol=1e-4), (stride, err)

        # bf16 path (v6e/v7x HBM / MXU rates): loose bf16 sanity bound.
        out_bf = jax.block_until_ready(
            basic_block_forward(x, params, stride=stride,
                                compute_dtype=jnp.bfloat16))
        err_bf = float(jnp.max(jnp.abs(out_bf - ref)))
        assert jnp.allclose(out_bf, ref, atol=1.5e-1, rtol=1e-1), (stride, err_bf)

    print("KERNEL_OK")
</pallas_src>

<mosaic_0001>
module attributes {stable_mosaic.version = 11 : i64} {
  func.func @_basic_block_kernel(%arg0: i32, %arg1: memref<2x1x18x144xf32, #tpu.memory_space<vmem>>, %arg2: memref<9x128xf32, #tpu.memory_space<vmem>>, %arg3: memref<128x256xf32, #tpu.memory_space<vmem>>, %arg4: memref<1x256xf32, #tpu.memory_space<vmem>>, %arg5: memref<2x16x256xf32, #tpu.memory_space<vmem>>) attributes {dimension_semantics = [#tpu.dimension_semantics<parallel>], iteration_bounds = array<i64: 2>, scalar_prefetch = 0 : i64, scratch_operands = 0 : i64, tpu.core_type = #tpu.core_type<tc>, window_params = [{transform_indices = @transform_0, window_bounds = array<i64: 2, 1, 18, 144>}, {pipeline_mode = #tpu.pipeline_mode<synchronous>, transform_indices = @transform_1, window_bounds = array<i64: 9, 128>}, {pipeline_mode = #tpu.pipeline_mode<synchronous>, transform_indices = @transform_2, window_bounds = array<i64: 128, 256>}, {pipeline_mode = #tpu.pipeline_mode<synchronous>, transform_indices = @transform_3, window_bounds = array<i64: 1, 256>}, {transform_indices = @transform_4, window_bounds = array<i64: 2, 16, 256>}]} {
    %c0 = arith.constant 0 : index
    %c0_0 = arith.constant 0 : index
    %0 = vector.load %arg3[%c0, %c0_0] : memref<128x256xf32, #tpu.memory_space<vmem>>, vector<128x256xf32>
    %c0_1 = arith.constant 0 : index
    %c0_2 = arith.constant 0 : index
    %1 = vector.load %arg4[%c0_1, %c0_2] : memref<1x256xf32, #tpu.memory_space<vmem>>, vector<1x256xf32>
    %cst = arith.constant 0.000000e+00 : f32
    %2 = vector.broadcast %cst : f32 to vector<2x16x128xf32>
    %c0_3 = arith.constant 0 : index
    %c0_4 = arith.constant 0 : index
    %c0_5 = arith.constant 0 : index
    %c0_6 = arith.constant 0 : index
    %3 = vector.load %arg1[%c0_3, %c0_4, %c0_5, %c0_6] : memref<2x1x18x144xf32, #tpu.memory_space<vmem>>, vector<2x1x16x144xf32>
    %4 = vector.shape_cast %3 : vector<2x1x16x144xf32> to vector<2x16x144xf32>
    %5 = vector.extract_strided_slice %4 {offsets = [0, 0, 0], sizes = [2, 16, 128], strides = [1, 1, 1]} : vector<2x16x144xf32> to vector<2x16x128xf32>
    %c0_7 = arith.constant 0 : index
    %c0_8 = arith.constant 0 : index
    %6 = vector.load %arg2[%c0_7, %c0_8] : memref<9x128xf32, #tpu.memory_space<vmem>>, vector<1x128xf32>
    %7 = vector.shape_cast %6 : vector<1x128xf32> to vector<1x1x128xf32>
    %8 = vector.broadcast %7 : vector<1x1x128xf32> to vector<2x16x128xf32>
    %9 = arith.mulf %5, %8 : vector<2x16x128xf32>
    %10 = arith.addf %2, %9 : vector<2x16x128xf32>
    %11 = vector.extract_strided_slice %4 {offsets = [0, 0, 8], sizes = [2, 16, 128], strides = [1, 1, 1]} : vector<2x16x144xf32> to vector<2x16x128xf32>
    %c1 = arith.constant 1 : index
    %c0_9 = arith.constant 0 : index
    %12 = vector.load %arg2[%c1, %c0_9] : memref<9x128xf32, #tpu.memory_space<vmem>>, vector<1x128xf32>
    %13 = vector.shape_cast %12 : vector<1x128xf32> to vector<1x1x128xf32>
    %14 = vector.broadcast %13 : vector<1x1x128xf32> to vector<2x16x128xf32>
    %15 = arith.mulf %11, %14 : vector<2x16x128xf32>
    %16 = arith.addf %10, %15 : vector<2x16x128xf32>
    %17 = vector.extract_strided_slice %4 {offsets = [0, 0, 16], sizes = [2, 16, 128], strides = [1, 1, 1]} : vector<2x16x144xf32> to vector<2x16x128xf32>
    %c2 = arith.constant 2 : index
    %c0_10 = arith.constant 0 : index
    %18 = vector.load %arg2[%c2, %c0_10] : memref<9x128xf32, #tpu.memory_space<vmem>>, vector<1x128xf32>
    %19 = vector.shape_cast %18 : vector<1x128xf32> to vector<1x1x128xf32>
    %20 = vector.broadcast %19 : vector<1x1x128xf32> to vector<2x16x128xf32>
    %21 = arith.mulf %17, %20 : vector<2x16x128xf32>
    %22 = arith.addf %16, %21 : vector<2x16x128xf32>
    %c0_11 = arith.constant 0 : index
    %c0_12 = arith.constant 0 : index
    %c1_13 = arith.constant 1 : index
    %c0_14 = arith.constant 0 : index
    %23 = vector.load %arg1[%c0_11, %c0_12, %c1_13, %c0_14] : memref<2x1x18x144xf32, #tpu.memory_space<vmem>>, vector<2x1x16x144xf32>
    %24 = vector.shape_cast %23 : vector<2x1x16x144xf32> to vector<2x16x144xf32>
    %25 = vector.extract_strided_slice %24 {offsets = [0, 0, 0], sizes = [2, 16, 128], strides = [1, 1, 1]} : vector<2x16x144xf32> to vector<2x16x128xf32>
    %c3 = arith.constant 3 : index
    %c0_15 = arith.constant 0 : index
    %26 = vector.load %arg2[%c3, %c0_15] : memref<9x128xf32, #tpu.memory_space<vmem>>, vector<1x128xf32>
    %27 = vector.shape_cast %26 : vector<1x128xf32> to vector<1x1x128xf32>
    %28 = vector.broadcast %27 : vector<1x1x128xf32> to vector<2x16x128xf32>
    %29 = arith.mulf %25, %28 : vector<2x16x128xf32>
    %30 = arith.addf %22, %29 : vector<2x16x128xf32>
    %31 = vector.extract_strided_slice %24 {offsets = [0, 0, 8], sizes = [2, 16, 128], strides = [1, 1, 1]} : vector<2x16x144xf32> to vector<2x16x128xf32>
    %c4 = arith.constant 4 : index
    %c0_16 = arith.constant 0 : index
    %32 = vector.load %arg2[%c4, %c0_16] : memref<9x128xf32, #tpu.memory_space<vmem>>, vector<1x128xf32>
    %33 = vector.shape_cast %32 : vector<1x128xf32> to vector<1x1x128xf32>
    %34 = vector.broadcast %33 : vector<1x1x128xf32> to vector<2x16x128xf32>
    %35 = arith.mulf %31, %34 : vector<2x16x128xf32>
    %36 = arith.addf %30, %35 : vector<2x16x128xf32>
    %37 = vector.extract_strided_slice %24 {offsets = [0, 0, 16], sizes = [2, 16, 128], strides = [1, 1, 1]} : vector<2x16x144xf32> to vector<2x16x128xf32>
    %c5 = arith.constant 5 : index
    %c0_17 = arith.constant 0 : index
    %38 = vector.load %arg2[%c5, %c0_17] : memref<9x128xf32, #tpu.memory_space<vmem>>, vector<1x128xf32>
    %39 = vector.shape_cast %38 : vector<1x128xf32> to vector<1x1x128xf32>
    %40 = vector.broadcast %39 : vector<1x1x128xf32> to vector<2x16x128xf32>
    %41 = arith.mulf %37, %40 : vector<2x16x128xf32>
    %42 = arith.addf %36, %41 : vector<2x16x128xf32>
    %c0_18 = arith.constant 0 : index
    %c0_19 = arith.constant 0 : index
    %c2_20 = arith.constant 2 : index
    %c0_21 = arith.constant 0 : index
    %43 = vector.load %arg1[%c0_18, %c0_19, %c2_20, %c0_21] : memref<2x1x18x144xf32, #tpu.memory_space<vmem>>, vector<2x1x16x144xf32>
    %44 = vector.shape_cast %43 : vector<2x1x16x144xf32> to vector<2x16x144xf32>
    %45 = vector.extract_strided_slice %44 {offsets = [0, 0, 0], sizes = [2, 16, 128], strides = [1, 1, 1]} : vector<2x16x144xf32> to vector<2x16x128xf32>
    %c6 = arith.constant 6 : index
    %c0_22 = arith.constant 0 : index
    %46 = vector.load %arg2[%c6, %c0_22] : memref<9x128xf32, #tpu.memory_space<vmem>>, vector<1x128xf32>
    %47 = vector.shape_cast %46 : vector<1x128xf32> to vector<1x1x128xf32>
    %48 = vector.broadcast %47 : vector<1x1x128xf32> to vector<2x16x128xf32>
    %49 = arith.mulf %45, %48 : vector<2x16x128xf32>
    %50 = arith.addf %42, %49 : vector<2x16x128xf32>
    %51 = vector.extract_strided_slice %44 {offsets = [0, 0, 8], sizes = [2, 16, 128], strides = [1, 1, 1]} : vector<2x16x144xf32> to vector<2x16x128xf32>
    %c7 = arith.constant 7 : index
    %c0_23 = arith.constant 0 : index
    %52 = vector.load %arg2[%c7, %c0_23] : memref<9x128xf32, #tpu.memory_space<vmem>>, vector<1x128xf32>
    %53 = vector.shape_cast %52 : vector<1x128xf32> to vector<1x1x128xf32>
    %54 = vector.broadcast %53 : vector<1x1x128xf32> to vector<2x16x128xf32>
    %55 = arith.mulf %51, %54 : vector<2x16x128xf32>
    %56 = arith.addf %50, %55 : vector<2x16x128xf32>
    %57 = vector.extract_strided_slice %44 {offsets = [0, 0, 16], sizes = [2, 16, 128], strides = [1, 1, 1]} : vector<2x16x144xf32> to vector<2x16x128xf32>
    %c8 = arith.constant 8 : index
    %c0_24 = arith.constant 0 : index
    %58 = vector.load %arg2[%c8, %c0_24] : memref<9x128xf32, #tpu.memory_space<vmem>>, vector<1x128xf32>
    %59 = vector.shape_cast %58 : vector<1x128xf32> to vector<1x1x128xf32>
    %60 = vector.broadcast %59 : vector<1x1x128xf32> to vector<2x16x128xf32>
    %61 = arith.mulf %57, %60 : vector<2x16x128xf32>
    %62 = arith.addf %56, %61 : vector<2x16x128xf32>
    %63 = vector.shape_cast %62 : vector<2x16x128xf32> to vector<32x128xf32>
    %cst_25 = arith.constant dense<0.000000e+00> : vector<32x256xf32>
    %64 = tpu.matmul %63, %0, %cst_25 {dimension_numbers = #tpu.dot_dimension_numbers<[1], [0], [0], [1], [0, 0, 1, 1], [], []>} : vector<32x128xf32>, vector<128x256xf32>, vector<32x256xf32> -> vector<32x256xf32>
    %65 = vector.broadcast %1 : vector<1x256xf32> to vector<32x256xf32>
    %66 = arith.addf %64, %65 : vector<32x256xf32>
    %67 = vector.shape_cast %66 : vector<32x256xf32> to vector<2x16x256xf32>
    %c0_26 = arith.constant 0 : index
    %c0_27 = arith.constant 0 : index
    %c0_28 = arith.constant 0 : index
    %68 = vector.load %arg5[%c0_26, %c0_27, %c0_28] : memref<2x16x256xf32, #tpu.memory_space<vmem>>, vector<2x16x256xf32>
    tpu.vector_store %arg5[%c0_26, %c0_27, %c0_28], %67 {strides = array<i32>} : memref<2x16x256xf32, #tpu.memory_space<vmem>>, vector<2x16x256xf32>,
    return
  }
  func.func @transform_0(%arg0: i32) -> (i32, i32, i32, i32) {
    %c0_i32 = arith.constant 0 : i32
    %c0_i32_0 = arith.constant 0 : i32
    %c0_i32_1 = arith.constant 0 : i32
    %c0_i32_2 = arith.constant 0 : i32
    return %arg0, %c0_i32, %c0_i32_0, %c0_i32_1 : i32, i32, i32, i32
  }
  func.func @transform_1(%arg0: i32) -> (i32, i32) {
    %c0_i32 = arith.constant 0 : i32
    %c0_i32_0 = arith.constant 0 : i32
    %c0_i32_1 = arith.constant 0 : i32
    return %c0_i32, %c0_i32_0 : i32, i32
  }
  func.func @transform_2(%arg0: i32) -> (i32, i32) {
    %c0_i32 = arith.constant 0 : i32
    %c0_i32_0 = arith.constant 0 : i32
    %c0_i32_1 = arith.constant 0 : i32
    return %c0_i32, %c0_i32_0 : i32, i32
  }
  func.func @transform_3(%arg0: i32) -> (i32, i32) {
    %c0_i32 = arith.constant 0 : i32
    %c0_i32_0 = arith.constant 0 : i32
    %c0_i32_1 = arith.constant 0 : i32
    return %c0_i32, %c0_i32_0 : i32, i32
  }
  func.func @transform_4(%arg0: i32) -> (i32, i32, i32) {
    %c0_i32 = arith.constant 0 : i32
    %c0_i32_0 = arith.constant 0 : i32
    %c0_i32_1 = arith.constant 0 : i32
    return %arg0, %c0_i32, %c0_i32_0 : i32, i32, i32
  }
}

</mosaic_0001>

<bundles_post_ra>
// kernel: tile.16
= control target key start
LH: loop header
LB: loop body
LE: loop exit
PB: predicated region body
PF: predicated region fallthrough
CT: control target
= control target key end

     0   :  { %s28_s0 = inlined_call_operand.vmem [shape: f32[16], index: 0, kind: input, shape index: {}]   ;;  %s29_s1 = inlined_call_operand.vmem [shape: f32[16,16], index: 1, kind: output, shape index: {}]  }
   0x1   :  { %v4_v0 = vld [vmem:[%s28_s0] ss:$0 sm:$0xff] }
   0x2   :  { %5 = vst [vmem:[%s29_s1] sm:$0xff] %v4_v0  ;;  %8 = vst [vmem:[%s29_s1 + $0x8] sm:$0xff] %v4_v0 }

// kernel: tile.17
= control target key start
LH: loop header
LB: loop body
LE: loop exit
PB: predicated region body
PF: predicated region fallthrough
CT: control target
= control target key end

     0   :  { %s7_s6 = smov 3  ;;  %s21_s9 = smov 3  ;;  %vm4_vm0 = vcmask 130048   ;;  %vm11_vm1 = vcmask 1048448   ;;  %vm18_vm2 = vcmask 917248   ;;  %vm25_vm3 = vcmask 786048   ;;  %s128_s0 = inlined_call_operand.vmem [shape: f32[16,16], index: 0, kind: input, shape index: {}]   ;;  %s129_s1 = inlined_call_operand.vmem [shape: f32[1,256], index: 1, kind: output, shape index: {}]  }
   0x1   :  { %v66_v0 = vld [vmem:[%s128_s0 + $0x7] ss:$8 sm:%s7_s6]   ;;  %s81_s10 = smov 112   ;;  %v68_v1 = vld [vmem:[%s128_s0 + $0x5] ss:$8 sm:%s21_s9]   ;;  %s14_s13 = smov 3 }
   0x2   :  { %9 = vrot.lane.b32.xlu0 %v66_v0, %s81_s10  ;;  %s82_s14 = smov 80   ;;  %v67_v2 = vld [vmem:[%s128_s0 + $0x6] ss:$8 sm:%s14_s13]   ;;  %s28_s17 = smov 3  ;;  %vm32_vm4 = vcmask 654848   ;;  %vm39_vm5 = vcmask 523648  }
   0x3   :  { %23 = vrot.lane.b32.xlu1 %v68_v1, %s82_s14  ;;  %v69_v3 = vld [vmem:[%s128_s0 + $0x4] ss:$8 sm:%s28_s17]   ;;  %s35_s20 = smov 3  ;;  %s42_s21 = smov 3  ;;  %vm46_vm6 = vcmask 392448   ;;  %vm53_vm7 = vcmask 261248  }
   0x4   :  { %s83_s22 = smov 96   ;;  %s84_s23 = smov 64   ;;  %v70_v4 = vld [vmem:[%s128_s0 + $0x3] ss:$8 sm:%s35_s20]   ;;  %v71_v5 = vld [vmem:[%s128_s0 + $0x2] ss:$8 sm:%s42_s21]  }
   0x5   :  { %s2_s26 = smov 3  ;;  %s49_s29 = smov 3 }
   0x6   :  { %16 = vrot.lane.b32.xlu0 %v67_v2, %s83_s22  ;;  %v3_v6 = vld [vmem:[%s128_s0] ss:$8 sm:%s2_s26]   ;;  %s85_s3 = smov 48   ;;  %s86_s4 = smov 32  }
   0x7   :  { %30 = vrot.lane.b32.xlu1 %v69_v3, %s84_s23  ;;  %5 = vst.msk [vmem:[#allocation0] ss:$8 sm:$0x3] %vm4_vm0, %v3_v6   ;;  %v72_v7 = vld [vmem:[%s128_s0 + $0x1] ss:$8 sm:%s49_s29]   ;;  %s87_s0 = smov 16  }
   0xa   :  { %37 = vrot.lane.b32.xlu0 %v70_v4, %s85_s3 }
   0xb   :  { %44 = vrot.lane.b32.xlu1 %v71_v5, %s86_s4 }
   0xe   :  { %51 = vrot.lane.b32.xlu0 %v72_v7, %s87_s0 }
  0x74   :  { %v10_v8 = vpop.permute.xlu0 %9  }
  0x75   :  { %12 = vst.msk [vmem:[#allocation0] ss:$8 sm:$0x3] %vm11_vm1, %v10_v8   ;;  %v24_v9 = vpop.permute.xlu1 %23  }
  0x78   :  { %v17_v10 = vpop.permute.xlu0 %16  }
  0x79   :  { %19 = vst.msk [vmem:[#allocation0] ss:$8 sm:$0x3] %vm18_vm2, %v17_v10   ;;  %v31_v11 = vpop.permute.xlu1 %30  }
  0x7a   :  { %26 = vst.msk [vmem:[#allocation0] ss:$8 sm:$0x3] %vm25_vm3, %v24_v9  }
  0x7b   :  { %33 = vst.msk [vmem:[#allocation0] ss:$8 sm:$0x3] %vm32_vm4, %v31_v11  }
  0x7c   :  { %v38_v12 = vpop.permute.xlu0 %37  }
  0x7d   :  { %40 = vst.msk [vmem:[#allocation0] ss:$8 sm:$0x3] %vm39_vm5, %v38_v12   ;;  %v45_v13 = vpop.permute.xlu1 %44  }
  0x7e   :  { %47 = vst.msk [vmem:[#allocation0] ss:$8 sm:$0x3] %vm46_vm6, %v45_v13  }
  0x80   :  { %v52_v14 = vpop.permute.xlu0 %51  }
  0x81   :  { %54 = vst.msk [vmem:[#allocation0] ss:$8 sm:$0x3] %vm53_vm7, %v52_v14  }
  0x88   :  { %v58_v15 = vld [vmem:[#allocation0] sm:$0x1]  ;;  %v62_v16 = vld [vmem:[#allocation0 + $0x8] sm:$0x1] }
  0x89   :  { %60 = vst [vmem:[%s129_s1] sm:$0x1] %v58_v15  ;;  %73 = vst [vmem:[%s129_s1 + $0x1] sm:$0x1] %v62_v16 }

// kernel: tile.12
= control target key start
LH: loop header
LB: loop body
LE: loop exit
PB: predicated region body
PF: predicated region fallthrough
CT: control target
= control target key end

     0   :  { %vm6_vm0 = vcmask 1043458   ;;  %s53_s10 = smov 3  ;;  %s56_s11 = smov 12  ;;  %vm10_vm1 = vcmask 1045508   ;;  %vm14_vm2 = vcmask 1047558   ;;  %vm16_vm3 = vcmask 64512   ;;  %s978_s0 = inlined_call_operand.vmem [shape: f32[9,16,8], index: 0, kind: input, shape index: {}]   ;;  %s979_s1 = inlined_call_operand.vmem [shape: f32[9,128], index: 1, kind: output, shape index: {}]  }
   0x1   :  { %v470_v0 = vld [vmem:[%s978_s0 + $0x8e] sm:$0x1]   ;;  %v464_v1 = vld [vmem:[%s978_s0 + $0x8f] sm:$0x1]   ;;  %s565_s12 = smov 112   ;;  %s566_s13 = smov 120  }
   0x2   :  { %76 = vrot.lane.b32.xlu1 %v470_v0, %s565_s12  ;;  %47 = vrot.lane.b32.xlu0 %v464_v1, %s566_s13  ;;  %v466_v2 = vld [vmem:[%s978_s0 + $0xe] ss:$16 sm:%s53_s10]   ;;  %s61_s16 = smov 48  ;;  %s66_s17 = smov 192  ;;  %vm43_vm4 = vcmask 1048512   ;;  %vm72_vm5 = vcmask 982912  }
   0x3   :  { %v467_v3 = vld [vmem:[%s978_s0 + $0xe] ss:$16 sm:%s56_s11]   ;;  %s24_s22 = smov 3  ;;  %s27_s23 = smov 12  ;;  %v476_v15 = vld [vmem:[%s978_s0 + $0x8d] sm:$0x1]  }
   0x4   :  { %v468_v4 = vld [vmem:[%s978_s0 + $0xe] ss:$16 sm:%s61_s16]   ;;  %v59_v5 = vsel %vm6_vm0, %v467_v3, %v466_v2  ;;  %v460_v7 = vld [vmem:[%s978_s0 + $0xf] ss:$16 sm:%s24_s22]   ;;  %s32_s28 = smov 48  ;;  %s37_s29 = smov 192 }
   0x5   :  { %v469_v6 = vld [vmem:[%s978_s0 + $0xe] ss:$16 sm:%s66_s17]   ;;  %v64_v8 = vsel %vm10_vm1, %v468_v4, %v59_v5  ;;  %v461_v9 = vld [vmem:[%s978_s0 + $0xf] ss:$16 sm:%s27_s23]   ;;  %s82_s5 = smov 3  ;;  %s85_s8 = smov 12 }
   0x6   :  { %v462_v10 = vld [vmem:[%s978_s0 + $0xf] ss:$16 sm:%s32_s28]   ;;  %v69_v11 = vsel %vm14_vm2, %v469_v6, %v64_v8  ;;  %v30_v12 = vsel %vm6_vm0, %v461_v9, %v460_v7  ;;  %s90_s9 = smov 48  ;;  %v472_v16 = vld [vmem:[%s978_s0 + $0xd] ss:$16 sm:%s82_s5]   ;;  %s95_s15 = smov 192 }
   0x7   :  { %v463_v13 = vld [vmem:[%s978_s0 + $0xf] ss:$16 sm:%s37_s29]   ;;  %70 = vrot.lane.b32.xlu1 %v69_v11, %s565_s12  ;;  %v35_v14 = vsel %vm10_vm1, %v462_v10, %v30_v12  ;;  %s111_s20 = smov 3  ;;  %s114_s21 = smov 12  ;;  %v482_v26 = vld [vmem:[%s978_s0 + $0x8c] sm:$0x1]  }
   0x8   :  { %v40_v17 = vsel %vm14_vm2, %v463_v13, %v35_v14  ;;  %v473_v18 = vld [vmem:[%s978_s0 + $0xd] ss:$16 sm:%s85_s8]   ;;  %s119_s23 = smov 48  ;;  %s124_s24 = smov 192  ;;  %v478_v23 = vld [vmem:[%s978_s0 + $0xc] ss:$16 sm:%s111_s20]  }
   0x9   :  { %v474_v19 = vld [vmem:[%s978_s0 + $0xd] ss:$16 sm:%s90_s9]   ;;  %41 = vrot.lane.b32.xlu0 %v40_v17, %s566_s13  ;;  %v88_v20 = vsel %vm6_vm0, %v473_v18, %v472_v16  ;;  %s140_s29 = smov 3  ;;  %s567_s30 = smov 104   ;;  %v488_v37 = vld [vmem:[%s978_s0 + $0x8b] sm:$0x1]  }
   0xa   :  { %v475_v21 = vld [vmem:[%s978_s0 + $0xd] ss:$16 sm:%s95_s15]   ;;  %v93_v22 = vsel %vm10_vm1, %v474_v19, %v88_v20  ;;  %v479_v24 = vld [vmem:[%s978_s0 + $0xc] ss:$16 sm:%s114_s21]   ;;  %s143_s6 = smov 12  ;;  %s148_s7 = smov 48 }
   0xb   :  { %105 = vrot.lane.b32.xlu1 %v476_v15, %s567_s30  ;;  %v98_v25 = vsel %vm14_vm2, %v475_v21, %v93_v22  ;;  %v117_v27 = vsel %vm6_vm0, %v479_v24, %v478_v23  ;;  %v480_v28 = vld [vmem:[%s978_s0 + $0xc] ss:$16 sm:%s119_s23]   ;;  %s153_s12 = smov 192  ;;  %s169_s16 = smov 3  ;;  %v494_v46 = vld [vmem:[%s978_s0 + $0x8a] sm:$0x1]  }
   0xc   :  { %v122_v29 = vsel %vm10_vm1, %v480_v28, %v117_v27  ;;  %v481_v30 = vld [vmem:[%s978_s0 + $0xc] ss:$16 sm:%s124_s24]   ;;  %v484_v31 = vld [vmem:[%s978_s0 + $0xb] ss:$16 sm:%s140_s29]   ;;  %s172_s17 = smov 12  ;;  %s177_s13 = smov 48 }
   0xd   :  { %99 = vrot.lane.b32.xlu0 %v98_v25, %s567_s30  ;;  %v485_v32 = vld [vmem:[%s978_s0 + $0xb] ss:$16 sm:%s143_s6]   ;;  %v127_v33 = vsel %vm14_vm2, %v481_v30, %v122_v29  ;;  %s568_s22 = smov 96   ;;  %s198_s27 = smov 3  ;;  %v500_v54 = vld [vmem:[%s978_s0 + $0x89] sm:$0x1]  }
   0xe   :  { %v146_v34 = vsel %vm6_vm0, %v485_v32, %v484_v31  ;;  %v486_v35 = vld [vmem:[%s978_s0 + $0xb] ss:$16 sm:%s148_s7]   ;;  %v490_v39 = vld [vmem:[%s978_s0 + $0xa] ss:$16 sm:%s169_s16]   ;;  %s182_s3 = smov 192  ;;  %s201_s4 = smov 12 }
   0xf   :  { %v487_v36 = vld [vmem:[%s978_s0 + $0xb] ss:$16 sm:%s153_s12]   ;;  %134 = vrot.lane.b32.xlu1 %v482_v26, %s568_s22  ;;  %v151_v38 = vsel %vm10_vm1, %v486_v35, %v146_v34  ;;  %s206_s5 = smov 48  ;;  %s227_s10 = smov 3  ;;  %v506_v62 = vld [vmem:[%s978_s0 + $0x88] sm:$0x1]  }
  0x10   :  { %v491_v40 = vld [vmem:[%s978_s0 + $0xa] ss:$16 sm:%s172_s17]   ;;  %v156_v43 = vsel %vm14_vm2, %v487_v36, %v151_v38  ;;  %v496_v44 = vld [vmem:[%s978_s0 + $0x9] ss:$16 sm:%s198_s27]   ;;  %s230_s11 = smov 12  ;;  %s569_s12 = smov 88  }
  0x11   :  { %v492_v41 = vld [vmem:[%s978_s0 + $0xa] ss:$16 sm:%s177_s13]   ;;  %128 = vrot.lane.b32.xlu0 %v127_v33, %s568_s22  ;;  %v175_v42 = vsel %vm6_vm0, %v491_v40, %v490_v39  ;;  %s211_s20 = smov 192  ;;  %s235_s24 = smov 48  ;;  %v512_v6 = vld [vmem:[%s978_s0 + $0x87] sm:$0x1]  }
  0x12   :  { %v497_v45 = vld [vmem:[%s978_s0 + $0x9] ss:$16 sm:%s201_s4]   ;;  %v180_v47 = vsel %vm10_vm1, %v492_v41, %v175_v42  ;;  %v493_v48 = vld [vmem:[%s978_s0 + $0xa] ss:$16 sm:%s182_s3]   ;;  %s256_s25 = smov 3  ;;  %s259_s26 = smov 12 }
  0x13   :  { %163 = vrot.lane.b32.xlu1 %v488_v37, %s569_s12  ;;  %v204_v49 = vsel %vm6_vm0, %v497_v45, %v496_v44  ;;  %v498_v50 = vld [vmem:[%s978_s0 + $0x9] ss:$16 sm:%s206_s5]   ;;  %v185_v53 = vsel %vm14_vm2, %v493_v48, %v180_v47  ;;  %s570_s27 = smov 80   ;;  %s240_s5 = smov 192  ;;  %v458_v9 = vld [vmem:[%s978_s0 + $0x80] sm:$0x1]  }
  0x14   :  { %v502_v51 = vld [vmem:[%s978_s0 + $0x8] ss:$16 sm:%s227_s10]   ;;  %v209_v55 = vsel %vm10_vm1, %v498_v50, %v204_v49  ;;  %v499_v56 = vld [vmem:[%s978_s0 + $0x9] ss:$16 sm:%s211_s20]   ;;  %s264_s10 = smov 48  ;;  %s571_s14 = smov 72  }
  0x15   :  { %157 = vrot.lane.b32.xlu0 %v156_v43, %s569_s12  ;;  %v503_v52 = vld [vmem:[%s978_s0 + $0x8] ss:$16 sm:%s230_s11]   ;;  %s285_s11 = smov 3  ;;  %v214_v61 = vsel %vm14_vm2, %v499_v56, %v209_v55  ;;  %s288_s12 = smov 12  ;;  %459 = vst.msk [vmem:[%s979_s1 + $0x8] sm:$0x1] %vm16_vm3, %v458_v9  }
  0x16   :  { %v233_v57 = vsel %vm6_vm0, %v503_v52, %v502_v51  ;;  %v504_v58 = vld [vmem:[%s978_s0 + $0x8] ss:$16 sm:%s235_s24]   ;;  %v508_v59 = vld [vmem:[%s978_s0 + $0x7] ss:$16 sm:%s256_s25]   ;;  %s269_s21 = smov 192  ;;  %s293_s25 = smov 48 }
  0x17   :  { %192 = vrot.lane.b32.xlu1 %v494_v46, %s570_s27  ;;  %v509_v60 = vld [vmem:[%s978_s0 + $0x7] ss:$16 sm:%s259_s26]   ;;  %v238_v63 = vsel %vm10_vm1, %v504_v58, %v233_v57  ;;  %s314_s26 = smov 3  ;;  %s317_s29 = smov 12  ;;  %v518_v15 = vld [vmem:[%s978_s0 + $0x86] sm:$0x1]  }
  0x18   :  { %v505_v0 = vld [vmem:[%s978_s0 + $0x8] ss:$16 sm:%s240_s5]   ;;  %v262_v1 = vsel %vm6_vm0, %v509_v60, %v508_v59  ;;  %v510_v2 = vld [vmem:[%s978_s0 + $0x7] ss:$16 sm:%s264_s10]   ;;  %s572_s30 = smov 64   ;;  %s298_s8 = smov 192 }
  0x19   :  { %186 = vrot.lane.b32.xlu0 %v185_v53, %s570_s27  ;;  %v514_v3 = vld [vmem:[%s978_s0 + $0x6] ss:$16 sm:%s285_s11]   ;;  %v243_v5 = vsel %vm14_vm2, %v505_v0, %v238_v63  ;;  %v267_v7 = vsel %vm10_vm1, %v510_v2, %v262_v1  ;;  %s322_s16 = smov 48  ;;  %s343_s17 = smov 3  ;;  %v524_v23 = vld [vmem:[%s978_s0 + $0x85] sm:$0x1]  }
  0x1a   :  { %v515_v4 = vld [vmem:[%s978_s0 + $0x6] ss:$16 sm:%s288_s12]   ;;  %v511_v8 = vld [vmem:[%s978_s0 + $0x7] ss:$16 sm:%s269_s21]   ;;  %s346_s18 = smov 12  ;;  %s573_s19 = smov 56  }
  0x1b   :  { %221 = vrot.lane.b32.xlu1 %v500_v54, %s571_s14  ;;  %v291_v10 = vsel %vm6_vm0, %v515_v4, %v514_v3  ;;  %v516_v11 = vld [vmem:[%s978_s0 + $0x6] ss:$16 sm:%s293_s25]   ;;  %v272_v14 = vsel %vm14_vm2, %v511_v8, %v267_v7  ;;  %s327_s25 = smov 192  ;;  %s351_s28 = smov 48  ;;  %v530_v35 = vld [vmem:[%s978_s0 + $0x84] sm:$0x1]  }
  0x1c   :  { %v520_v12 = vld [vmem:[%s978_s0 + $0x5] ss:$16 sm:%s314_s26]   ;;  %v296_v16 = vsel %vm10_vm1, %v516_v11, %v291_v10  ;;  %v517_v17 = vld [vmem:[%s978_s0 + $0x6] ss:$16 sm:%s298_s8]   ;;  %s356_s2 = smov 192  ;;  %s372_s3 = smov 3 }
  0x1d   :  { %215 = vrot.lane.b32.xlu0 %v214_v61, %s571_s14  ;;  %v521_v13 = vld [vmem:[%s978_s0 + $0x5] ss:$16 sm:%s317_s29]   ;;  %v301_v22 = vsel %vm14_vm2, %v517_v17, %v296_v16  ;;  %s375_s4 = smov 12  ;;  %s380_s5 = smov 48  ;;  %v536_v46 = vld [vmem:[%s978_s0 + $0x83] sm:$0x1]  }
  0x1e   :  { %v320_v18 = vsel %vm6_vm0, %v521_v13, %v520_v12  ;;  %v522_v19 = vld [vmem:[%s978_s0 + $0x5] ss:$16 sm:%s322_s16]   ;;  %v526_v20 = vld [vmem:[%s978_s0 + $0x4] ss:$16 sm:%s343_s17]   ;;  %s574_s6 = smov 48   ;;  %s2_s11 = smov 3 }
  0x1f   :  { %250 = vrot.lane.b32.xlu1 %v506_v62, %s572_s30  ;;  %v527_v21 = vld [vmem:[%s978_s0 + $0x4] ss:$16 sm:%s346_s18]   ;;  %v325_v24 = vsel %vm10_vm1, %v522_v19, %v320_v18  ;;  %s4_s12 = smov 12  ;;  %s8_s18 = smov 48  ;;  %v542_v56 = vld [vmem:[%s978_s0 + $0x82] sm:$0x1]  }
  0x20   :  { %v523_v25 = vld [vmem:[%s978_s0 + $0x5] ss:$16 sm:%s327_s25]   ;;  %v349_v26 = vsel %vm6_vm0, %v527_v21, %v526_v20  ;;  %v528_v27 = vld [vmem:[%s978_s0 + $0x4] ss:$16 sm:%s351_s28]   ;;  %s401_s22 = smov 3  ;;  %s12_s23 = smov 192 }
  0x21   :  { %244 = vrot.lane.b32.xlu0 %v243_v5, %s572_s30  ;;  %v532_v28 = vld [vmem:[%s978_s0 + $0x3] ss:$16 sm:%s372_s3]   ;;  %v330_v31 = vsel %vm14_vm2, %v523_v25, %v325_v24  ;;  %s404_s26 = smov 12  ;;  %v354_v36 = vsel %vm10_vm1, %v528_v27, %v349_v26  ;;  %s385_s7 = smov 192  ;;  %v548_v62 = vld [vmem:[%s978_s0 + $0x81] sm:$0x1]  }
  0x22   :  { %v529_v29 = vld [vmem:[%s978_s0 + $0x4] ss:$16 sm:%s356_s2]   ;;  %v533_v30 = vld [vmem:[%s978_s0 + $0x3] ss:$16 sm:%s375_s4]   ;;  %s575_s2 = smov 40   ;;  %s409_s15 = smov 48 }
  0x23   :  { %279 = vrot.lane.b32.xlu1 %v512_v6, %s573_s19  ;;  %v534_v32 = vld [vmem:[%s978_s0 + $0x3] ss:$16 sm:%s380_s5]   ;;  %v378_v39 = vsel %vm6_vm0, %v533_v30, %v532_v28  ;;  %s430_s16 = smov 3  ;;  %v359_v45 = vsel %vm14_vm2, %v529_v29, %v354_v36  ;;  %s433_s17 = smov 12  ;;  %vm101_vm6 = vcmask 917312   ;;  %vm130_vm7 = vcmask 851712  }
  0x24   :  { %v3_v33 = vld [vmem:[%s978_s0] ss:$16 sm:%s2_s11]   ;;  %v538_v40 = vld [vmem:[%s978_s0 + $0x2] ss:$16 sm:%s401_s22]   ;;  %s576_s20 = smov 32   ;;  %v383_v47 = vsel %vm10_vm1, %v534_v32, %v378_v39  ;;  %s577_s3 = smov 24  }
  0x25   :  { %273 = vrot.lane.b32.xlu0 %v272_v14, %s573_s19  ;;  %v5_v34 = vld [vmem:[%s978_s0] ss:$16 sm:%s4_s12]   ;;  %s443_s10 = smov 192  ;;  %s578_s11 = smov 16   ;;  %vm159_vm8 = vcmask 786112   ;;  %vm188_vm9 = vcmask 720512  }
  0x26   :  { %v7_v37 = vsel %vm6_vm0, %v5_v34, %v3_v33  ;;  %v9_v38 = vld [vmem:[%s978_s0] ss:$16 sm:%s8_s18]   ;;  %v539_v43 = vld [vmem:[%s978_s0 + $0x2] ss:$16 sm:%s404_s26]   ;;  %s414_s26 = smov 192  ;;  %vm217_vm10 = vcmask 654912  }
  0x27   :  { %308 = vrot.lane.b32.xlu1 %v518_v15, %s574_s6  ;;  %v11_v41 = vsel %vm10_vm1, %v9_v38, %v7_v37  ;;  %v13_v42 = vld [vmem:[%s978_s0] ss:$16 sm:%s12_s23]   ;;  %v407_v49 = vsel %vm6_vm0, %v539_v43, %v538_v40  ;;  %vm246_vm11 = vcmask 589312   ;;  %vm275_vm12 = vcmask 523712  }
  0x28   :  { %v15_v44 = vsel %vm14_vm2, %v13_v42, %v11_v41  ;;  %v535_v48 = vld [vmem:[%s978_s0 + $0x3] ss:$16 sm:%s385_s7]   ;;  %v540_v50 = vld [vmem:[%s978_s0 + $0x2] ss:$16 sm:%s409_s15]   ;;  %vm304_vm13 = vcmask 458112   ;;  %vm333_vm14 = vcmask 392512  }
  0x29   :  { %302 = vrot.lane.b32.xlu0 %v301_v22, %s574_s6  ;;  %17 = vst.msk [vmem:[%s979_s1] sm:$0xff] %vm16_vm3, %v15_v44   ;;  %v544_v51 = vld [vmem:[%s978_s0 + $0x1] ss:$16 sm:%s430_s16]   ;;  %v388_v53 = vsel %vm14_vm2, %v535_v48, %v383_v47  ;;  %v412_v54 = vsel %vm10_vm1, %v540_v50, %v407_v49  ;;  %vm362_vm15 = vcmask 326912  }
  0x2a   :  { %v545_v52 = vld [vmem:[%s978_s0 + $0x1] ss:$16 sm:%s433_s17]   ;;  %v541_v55 = vld [vmem:[%s978_s0 + $0x2] ss:$16 sm:%s414_s26]  }
  0x2b   :  { %337 = vrot.lane.b32.xlu1 %v524_v23, %s575_s2  ;;  %v436_v57 = vsel %vm6_vm0, %v545_v52, %v544_v51  ;;  %v417_v59 = vsel %vm14_vm2, %v541_v55, %v412_v54  ;;  %v547_v61 = vld [vmem:[%s978_s0 + $0x1] ss:$16 sm:%s443_s10]   ;;  %vm391_vm0 = vcmask 261312  }
  0x2d   :  { %331 = vrot.lane.b32.xlu0 %v330_v31, %s575_s2  ;;  %s438_s2 = smov 48 }
  0x2e   :  { %v546_v58 = vld [vmem:[%s978_s0 + $0x1] ss:$16 sm:%s438_s2]   ;;  %s579_s0 = smov 8  }
  0x2f   :  { %366 = vrot.lane.b32.xlu1 %v530_v35, %s576_s20  ;;  %v441_v60 = vsel %vm10_vm1, %v546_v58, %v436_v57  ;;  %vm420_vm1 = vcmask 195712  }
  0x30   :  { %v446_v63 = vsel %vm14_vm2, %v547_v61, %v441_v60  ;;  %vm449_vm2 = vcmask 130112  }
  0x31   :  { %360 = vrot.lane.b32.xlu0 %v359_v45, %s576_s20 }
  0x33   :  { %395 = vrot.lane.b32.xlu1 %v536_v46, %s577_s3 }
  0x35   :  { %389 = vrot.lane.b32.xlu0 %v388_v53, %s577_s3 }
  0x37   :  { %424 = vrot.lane.b32.xlu1 %v542_v56, %s578_s11 }
  0x39   :  { %418 = vrot.lane.b32.xlu0 %v417_v59, %s578_s11 }
  0x3b   :  { %453 = vrot.lane.b32.xlu1 %v548_v62, %s579_s0 }
  0x3d   :  { %447 = vrot.lane.b32.xlu0 %v446_v63, %s579_s0 }
  0x74   :  { %v77_v0 = vpop.permute.xlu1 %76   ;;  %v48_v1 = vpop.permute.xlu0 %47  }
  0x75   :  { %465 = vst.msk [vmem:[%s979_s1 + $0x8] sm:$0x1] %vm43_vm4, %v48_v1  }
  0x76   :  { %471 = vst.msk [vmem:[%s979_s1 + $0x8] sm:$0x1] %vm72_vm5, %v77_v0  }
  0x79   :  { %v71_v2 = vpop.permute.xlu1 %70  }
  0x7b   :  { %v42_v3 = vpop.permute.xlu0 %41  }
  0x7c   :  { %44 = vst.msk [vmem:[%s979_s1] sm:$0xff] %vm43_vm4, %v42_v3  }
  0x7d   :  { %73 = vst.msk [vmem:[%s979_s1] sm:$0xff] %vm72_vm5, %v71_v2   ;;  %v106_v4 = vpop.permute.xlu1 %105  }
  0x7e   :  { %477 = vst.msk [vmem:[%s979_s1 + $0x8] sm:$0x1] %vm101_vm6, %v106_v4  }
  0x7f   :  { %v100_v5 = vpop.permute.xlu0 %99  }
  0x80   :  { %102 = vst.msk [vmem:[%s979_s1] sm:$0xff] %vm101_vm6, %v100_v5  }
  0x81   :  { %v135_v6 = vpop.permute.xlu1 %134  }
  0x82   :  { %483 = vst.msk [vmem:[%s979_s1 + $0x8] sm:$0x1] %vm130_vm7, %v135_v6  }
  0x83   :  { %v129_v7 = vpop.permute.xlu0 %128  }
  0x84   :  { %131 = vst.msk [vmem:[%s979_s1] sm:$0xff] %vm130_vm7, %v129_v7  }
  0x85   :  { %v164_v8 = vpop.permute.xlu1 %163  }
  0x86   :  { %489 = vst.msk [vmem:[%s979_s1 + $0x8] sm:$0x1] %vm159_vm8, %v164_v8  }
  0x87   :  { %v158_v9 = vpop.permute.xlu0 %157  }
  0x88   :  { %160 = vst.msk [vmem:[%s979_s1] sm:$0xff] %vm159_vm8, %v158_v9  }
  0x89   :  { %v193_v10 = vpop.permute.xlu1 %192  }
  0x8a   :  { %495 = vst.msk [vmem:[%s979_s1 + $0x8] sm:$0x1] %vm188_vm9, %v193_v10  }
  0x8b   :  { %v187_v11 = vpop.permute.xlu0 %186  }
  0x8c   :  { %189 = vst.msk [vmem:[%s979_s1] sm:$0xff] %vm188_vm9, %v187_v11  }
  0x8d   :  { %v222_v12 = vpop.permute.xlu1 %221  }
  0x8e   :  { %501 = vst.msk [vmem:[%s979_s1 + $0x8] sm:$0x1] %vm217_vm10, %v222_v12  }
  0x8f   :  { %v216_v13 = vpop.permute.xlu0 %215  }
  0x90   :  { %218 = vst.msk [vmem:[%s979_s1] sm:$0xff] %vm217_vm10, %v216_v13  }
  0x91   :  { %v251_v14 = vpop.permute.xlu1 %250  }
  0x92   :  { %507 = vst.msk [vmem:[%s979_s1 + $0x8] sm:$0x1] %vm246_vm11, %v251_v14  }
  0x93   :  { %v245_v15 = vpop.permute.xlu0 %244  }
  0x94   :  { %247 = vst.msk [vmem:[%s979_s1] sm:$0xff] %vm246_vm11, %v245_v15  }
  0x95   :  { %v280_v16 = vpop.permute.xlu1 %279  }
  0x96   :  { %513 = vst.msk [vmem:[%s979_s1 + $0x8] sm:$0x1] %vm275_vm12, %v280_v16  }
  0x97   :  { %v274_v17 = vpop.permute.xlu0 %273  }
  0x98   :  { %276 = vst.msk [vmem:[%s979_s1] sm:$0xff] %vm275_vm12, %v274_v17  }
  0x99   :  { %v309_v18 = vpop.permute.xlu1 %308  }
  0x9a   :  { %519 = vst.msk [vmem:[%s979_s1 + $0x8] sm:$0x1] %vm304_vm13, %v309_v18  }
  0x9b   :  { %v303_v19 = vpop.permute.xlu0 %302  }
  0x9c   :  { %305 = vst.msk [vmem:[%s979_s1] sm:$0xff] %vm304_vm13, %v303_v19  }
  0x9d   :  { %v338_v20 = vpop.permute.xlu1 %337  }
  0x9e   :  { %525 = vst.msk [vmem:[%s979_s1 + $0x8] sm:$0x1] %vm333_vm14, %v338_v20  }
  0x9f   :  { %v332_v21 = vpop.permute.xlu0 %331  }
  0xa0   :  { %334 = vst.msk [vmem:[%s979_s1] sm:$0xff] %vm333_vm14, %v332_v21  }
  0xa1   :  { %v367_v22 = vpop.permute.xlu1 %366  }
  0xa2   :  { %531 = vst.msk [vmem:[%s979_s1 + $0x8] sm:$0x1] %vm362_vm15, %v367_v22  }
  0xa3   :  { %v361_v23 = vpop.permute.xlu0 %360  }
  0xa4   :  { %363 = vst.msk [vmem:[%s979_s1] sm:$0xff] %vm362_vm15, %v361_v23  }
  0xa5   :  { %v396_v24 = vpop.permute.xlu1 %395  }
  0xa6   :  { %537 = vst.msk [vmem:[%s979_s1 + $0x8] sm:$0x1] %vm391_vm0, %v396_v24  }
  0xa7   :  { %v390_v25 = vpop.permute.xlu0 %389  }
  0xa8   :  { %392 = vst.msk [vmem:[%s979_s1] sm:$0xff] %vm391_vm0, %v390_v25  }
  0xa9   :  { %v425_v26 = vpop.permute.xlu1 %424  }
  0xaa   :  { %543 = vst.msk [vmem:[%s979_s1 + $0x8] sm:$0x1] %vm420_vm1, %v425_v26  }
  0xab   :  { %v419_v27 = vpop.permute.xlu0 %418  }
  0xac   :  { %421 = vst.msk [vmem:[%s979_s1] sm:$0xff] %vm420_vm1, %v419_v27  }
  0xad   :  { %v454_v28 = vpop.permute.xlu1 %453  }
  0xae   :  { %549 = vst.msk [vmem:[%s979_s1 + $0x8] sm:$0x1] %vm449_vm2, %v454_v28  }
  0xaf   :  { %v448_v29 = vpop.permute.xlu0 %447  }
  0xb0   :  { %450 = vst.msk [vmem:[%s979_s1] sm:$0xff] %vm449_vm2, %v448_v29  }

// kernel: basic_block_forward.1
= control target key start
LH: loop header
LB: loop body
LE: loop exit
PB: predicated region body
PF: predicated region fallthrough
CT: control target
= control target key end

     0   :  { %s1068_s15 = smov 0   ;;  %s1658_s0 = inlined_call_operand.vmem [shape: f32[4,1,18,144], index: 0, kind: input, shape index: {}]   ;;  %s1659_s1 = inlined_call_operand.vmem [shape: f32[9,128], index: 1, kind: input, shape index: {}]   ;;  %s1660_s2 = inlined_call_operand.vmem [shape: f32[128,256], index: 2, kind: input, shape index: {}]   ;;  %s1661_s3 = inlined_call_operand.vmem [shape: f32[1,256], index: 3, kind: input, shape index: {}]   ;;  %s1662_s4 = inlined_call_operand.vmem [shape: f32[4,16,256], index: 4, kind: output, shape index: {}]  }
   0x1 LB: > { %s946_s16 = sadd.s32 4294967295, %s1036_s15   ;;  %p950_p0 = scmp.ge.s32.totalorder %s1036_s15, 1  ;;  %s1036_s15 = sphi %s1068_s15, %s14_s15  }
   0x2   : > { %p164_p1 = scmp.lt.s32.totalorder %s1036_s15, 3 }
   0x4   : > { %p165_p2 = pnand %p950_p0, %p164_p1 }
   0x5   : > { %v957_v0 = vld [vmem:[%s1659_s1 + $0x1] ss:$0 sm:$0xff] (!%p165_p2)  ;;  %s1038_s19 = smov (!%p165_p2), 8   ;;  %v960_v1 = vld [vmem:[%s1659_s1 + $0x4] ss:$0 sm:$0xff] (!%p165_p2)  ;;  %s1039_s26 = smov (!%p165_p2), 16  }
   0x6   : > { %168 = sbr.rel (%p165_p2) target bundleno = 549 (0x225), region = 36  ;;  %266 = vrot.lane.b32.xlu0 (!%p165_p2), %v957_v0, %s1038_s19  ;;  %v958_v2 = vld [vmem:[%s1659_s1 + $0x2] ss:$0 sm:$0xff] (!%p165_p2)  ;;  %418 = vrot.lane.b32.xlu1 (!%p165_p2), %v960_v1, %s1038_s19  ;;  %v961_v3 = vld [vmem:[%s1659_s1 + $0x5] ss:$0 sm:$0xff] (!%p165_p2)  ;;  %s951_s5 = sshll.u32 (!%p165_p2), %s946_s16, 1 }
   0x7   : > { %v963_v4 = vld [vmem:[%s1659_s1 + $0x7] ss:$0 sm:$0xff] (!%p165_p2)  ;;  %v964_v5 = vld [vmem:[%s1659_s1 + $0x8] ss:$0 sm:$0xff] (!%p165_p2)  ;;  %p193_p3 = scmp.lt.s32.totalorder (!%p165_p2), %s951_s5, 3  ;;  %s1040_s10 = smov (!%p165_p2), 120  }
   0x8   : > { %s1041_s11 = smov (!%p165_p2), 112   ;;  %vm393_vm0 = vcmask (!%p165_p2), 1046528   ;;  %v1175_v46 = vld [vmem:[%s1659_s1 + $0x3] ss:$0 sm:$0xff] (!%p165_p2)  ;;  %vm599_vm1 = vcmask (!%p165_p2), 1045504   ;;  %vm301_vm2 = vcmask (!%p165_p2), 982016  }
   0x9   : > { %vm355_vm3 = vcmask (!%p165_p2), 916480  }
   0xa   : > { %320 = vrot.lane.b32.xlu0 (!%p165_p2), %v958_v2, %s1039_s26  ;;  %499 = vrot.lane.b32.xlu1 (!%p165_p2), %v961_v3, %s1039_s26 }
   0xd   : > { %s1664_s5 = smov (!%p193_p3, %s951_s5), 3 }
   0xe   : > { %624 = vrot.lane.b32.xlu0 %v963_v4, %s1038_s19  ;;  %705 = vrot.lane.b32.xlu1 %v964_v5, %s1039_s26  ;;  %s1016_s6 = smul.u32 48, %s1664_s5  ;;  %s967_s19 = sshll.u32 %s1664_s5, 5 }
   0xf   : > { %s204_s22 = scalar_lea.vmem %s1662_s4, %s967_s19 }
  0x10   : > { %s1100_s9 = scalar_lea.vmem %s1658_s0, %s1016_s6 }
  0x11   : > { %v240_v6 = vld [vmem:[%s1100_s9 + $0x8] sm:$0xff]  ;;  %v1104_v7 = vld [vmem:[%s1100_s9] sm:$0xff]  ;;  %v244_v11 = vld [vmem:[%s1100_s9 + $0x38] sm:$0xff] }
  0x12   : > { %v1109_v12 = vld [vmem:[%s1100_s9 + $0x30] sm:$0xff]  ;;  %v1121_v20 = vld [vmem:[%s1100_s9 + $0x18] sm:$0xff]  ;;  %v1131_v24 = vld [vmem:[%s1100_s9 + $0x48] sm:$0xff] }
  0x13   : > { %v1124_v21 = vld [vmem:[%s1100_s9 + $0x10] sm:$0xff]  ;;  %v1134_v25 = vld [vmem:[%s1100_s9 + $0x40] sm:$0xff]  ;;  %v369_v27 = vld [vmem:[%s1100_s9 + $0x8] sm:$0xfe] }
  0x14   : > { %v368_v28 = vld [vmem:[%s1100_s9] sm:$0xfe]  ;;  %v373_v34 = vld [vmem:[%s1100_s9 + $0x38] sm:$0xfe]  ;;  %v1158_v36 = vld [vmem:[%s1100_s9 + $0x30] sm:$0xfe]  ;;  %v1199_v56 = vmul.f32 %v1175_v46, %v1124_v21 }
  0x15   : > { %v381_v55 = vmul.f32 %v1175_v46, %v368_v28 }
  0x78   : > { %v267_v8 = vpop.permute.xlu0 %266  ;;  %v1138_v26 = vpop.permute.xlu1 %418 }
  0x79   : > { %v270_v9 = vmul.f32 %v267_v8, %v240_v6  ;;  %v269_v10 = vmul.f32 %v267_v8, %v1104_v7  ;;  %v274_v14 = vmul.f32 %v267_v8, %v244_v11  ;;  %v273_v15 = vmul.f32 %v267_v8, %v1109_v12 }
  0x7a   : > { %v272_v22 = vmul.f32 %v267_v8, %v1121_v20  ;;  %v271_v23 = vmul.f32 %v267_v8, %v1124_v21  ;;  %v276_v29 = vmul.f32 %v267_v8, %v1131_v24  ;;  %v275_v30 = vmul.f32 %v267_v8, %v1134_v25 }
  0x7b   : > { %287 = vrot.lane.b32.xlu1 %v270_v9, %s1040_s10  ;;  %285 = vrot.lane.b32.xlu0 %v269_v10, %s1040_s10  ;;  %v422_v31 = vmul.f32 %v1138_v26, %v369_v27  ;;  %v1147_v32 = vmul.f32 %v1138_v26, %v1121_v20  ;;  %v421_v33 = vmul.f32 %v1138_v26, %v368_v28  ;;  %v394_v8 = vrot.slane %v381_v55, 1  ;;  %v207_v10 = vld [vmem:[%s1660_s2 + $0x8] sm:$0xff] }
  0x7c   : > { %v321_v13 = vpop.permute.xlu0 %320  ;;  %v1155_v35 = vmul.f32 %v1138_v26, %v1124_v21  ;;  %v1160_v37 = vpop.permute.xlu1 %499  ;;  %v428_v40 = vmul.f32 %v1138_v26, %v373_v34  ;;  %v1167_v41 = vmul.f32 %v1138_v26, %v1131_v24  ;;  %v427_v45 = vmul.f32 %v1138_v26, %v1158_v36 }
  0x7d   : > { %v324_v16 = vmul.f32 %v321_v13, %v240_v6  ;;  %v323_v17 = vmul.f32 %v321_v13, %v1104_v7  ;;  %v328_v18 = vmul.f32 %v321_v13, %v244_v11  ;;  %v327_v19 = vmul.f32 %v321_v13, %v1109_v12  ;;  %v1225_v6 = vld [vmem:[%s1100_s9 + $0x28] sm:$0x1]  ;;  %v209_v11 = vld [vmem:[%s1660_s2 + $0x18] sm:$0xff] }
  0x7e   : > { %v326_v38 = vmul.f32 %v321_v13, %v1121_v20  ;;  %v325_v39 = vmul.f32 %v321_v13, %v1124_v21  ;;  %v448_v42 = vrot.slane %v422_v31, 1  ;;  %v449_v43 = vrot.slane %v1147_v32, 1 }
  0x7f   : > { %295 = vrot.lane.b32.xlu1 %v274_v14, %s1040_s10  ;;  %293 = vrot.lane.b32.xlu0 %v273_v15, %s1040_s10  ;;  %v445_v44 = vrot.slane %v421_v33, 1  ;;  %v446_v47 = vrot.slane %v1155_v35, 1  ;;  %v1182_v48 = vmul.f32 %v1138_v26, %v1134_v25  ;;  %v503_v49 = vmul.f32 %v1160_v37, %v369_v27  ;;  %v208_v14 = vld [vmem:[%s1660_s2 + $0x10] sm:$0xff]  ;;  %v227_v35 = vld [vmem:[%s1660_s2 + $0xa8] sm:$0xff] }
  0x80   : > { %v1187_v50 = vmul.f32 %v1160_v37, %v1121_v20  ;;  %v502_v51 = vmul.f32 %v1160_v37, %v368_v28  ;;  %v1192_v52 = vmul.f32 %v1160_v37, %v1124_v21  ;;  %v330_v53 = vmul.f32 %v321_v13, %v1131_v24 }
  0x81   : > { %v329_v54 = vmul.f32 %v321_v13, %v1134_v25  ;;  %v450_v57 = vsel %vm393_vm0, %v448_v42, %v449_v43  ;;  %v458_v58 = vrot.slane %v428_v40, 1  ;;  %v459_v59 = vrot.slane %v1167_v41, 1  ;;  %v206_v13 = vld [vmem:[%s1660_s2] sm:$0xff]  ;;  %v1293_v42 = vld [vmem:[%s1100_s9 + $0x50] sm:$0x1] }
  0x82   : > { %v455_v60 = vrot.slane %v427_v45, 1  ;;  %v447_v61 = vsel %vm393_vm0, %v445_v44, %v446_v47  ;;  %v456_v62 = vrot.slane %v1182_v48, 1  ;;  %v529_v63 = vrot.slane %v503_v49, 1  ;;  %v1290_v40 = vld [vmem:[%s1659_s1 + $0x6] ss:$0 sm:$0xff]  ;;  %v231_v48 = vld [vmem:[%s1660_s2 + $0xc8] sm:$0xff] }
  0x83   : > { %341 = vrot.lane.b32.xlu1 %v324_v16, %s1041_s11  ;;  %339 = vrot.lane.b32.xlu0 %v323_v17, %s1041_s11  ;;  %v530_v0 = vrot.slane %v1187_v50, 1  ;;  %v526_v1 = vrot.slane %v502_v51, 1  ;;  %v527_v2 = vrot.slane %v1192_v52, 1  ;;  %v1214_v3 = vmul.f32 %v1160_v37, %v373_v34  ;;  %v1296_v44 = vld [vmem:[%s1100_s9] sm:$0xfc] }
  0x84   : > { %v1218_v4 = vmul.f32 %v1160_v37, %v1131_v24  ;;  %v1222_v5 = vmul.f32 %v1160_v37, %v1158_v36  ;;  %v395_v9 = vrot.slane %v1199_v56, 1  ;;  %v460_v15 = vsel %vm393_vm0, %v458_v58, %v459_v59  ;;  %v215_v58 = vld [vmem:[%s1660_s2 + $0x48] sm:$0xff]  ;;  %v1363_v56 = vld [vmem:[%s1100_s9 + $0x20] sm:$0x3] }
  0x85   : > { %v457_v16 = vsel %vm393_vm0, %v455_v60, %v456_v62  ;;  %v1250_v17 = vmul.f32 %v1160_v37, %v1134_v25  ;;  %v539_v27 = vrot.slane %v1214_v3, 1  ;;  %v1272_v31 = vmul.f32 %v1138_v26, %v1225_v6  ;;  %v217_v60 = vld [vmem:[%s1660_s2 + $0x58] sm:$0xff] }
  0x86   : > { %v540_v28 = vrot.slane %v1218_v4, 1  ;;  %v1277_v33 = vsel %vm393_vm0, %v394_v8, %v395_v9  ;;  %v384_v34 = vmul.f32 %v1175_v46, %v1158_v36  ;;  %v385_v36 = vmul.f32 %v1175_v46, %v1134_v25 }
  0x87   : > { %349 = vrot.lane.b32.xlu1 %v328_v18, %s1041_s11  ;;  %347 = vrot.lane.b32.xlu0 %v327_v19, %s1041_s11  ;;  %v211_v18 = vld [vmem:[%s1660_s2 + $0x28] sm:$0xff]  ;;  %v213_v19 = vld [vmem:[%s1660_s2 + $0x38] sm:$0xff]  ;;  %v968_v45 = vpack.c.bf16 %v209_v11, %v207_v10  ;;  %v970_v49 = vpack.c.bf16 %v208_v14, %v206_v13  ;;  %v386_v3 = vmul.f32 %v1175_v46, %v1293_v42 }
  0x88   : > { %v972_v51 = vpack.c.bf16 %v213_v19, %v211_v18  ;;  %v399_v55 = vrot.slane %v384_v34, 1  ;;  %v587_v8 = vmul.f32 %v1290_v40, %v1296_v44  ;;  %v1323_v10 = vld [vmem:[%s1100_s9 + $0x58] sm:$0x1]  ;;  %v976_v13 = vpack.c.bf16 %v217_v60, %v215_v58  ;;  %v214_v18 = vld [vmem:[%s1660_s2 + $0x40] sm:$0xff]  ;;  %v216_v19 = vld [vmem:[%s1660_s2 + $0x50] sm:$0xff] }
  0x89   : > { %969 = vmatprep.subr.bf16.mxu0 %v968_v45  ;;  %1000 = vmatprep.subr.bf16.mxu1 %v968_v45  ;;  %v588_v14 = vmul.f32 %v1290_v40, %v1124_v21  ;;  %v219_v45 = vld [vmem:[%s1660_s2 + $0x68] sm:$0xff]  ;;  %v978_v58 = vpack.c.bf16 %v216_v19, %v214_v18  ;;  %v513_v50 = vmul.f32 %v1160_v37, %v1323_v10 }
  0x8a   : > { %971 = vmatpush1.bf16.msra.mxu0 %v970_v49  ;;  %1008 = vmatpush1.bf16.msra.mxu1 %v970_v49  ;;  %v600_v34 = vrot.slane %v587_v8, 2  ;;  %v221_v49 = vld [vmem:[%s1660_s2 + $0x78] sm:$0xff]  ;;  %v220_v8 = vld [vmem:[%s1660_s2 + $0x70] sm:$0xff] }
  0x8b   : > { %291 = vrot.lane.b32.xlu1 %v272_v22, %s1040_s10  ;;  %289 = vrot.lane.b32.xlu0 %v271_v23, %s1040_s10  ;;  %v531_v22 = vsel %vm393_vm0, %v529_v63, %v530_v0  ;;  %v528_v23 = vsel %vm393_vm0, %v526_v1, %v527_v2  ;;  %v400_v63 = vrot.slane %v385_v36, 1 }
  0x8c   : > { %973 = vmatprep.subr.bf16.mxu0 %v972_v51  ;;  %1001 = vmatprep.subr.bf16.mxu1 %v972_v51 }
  0x8f   : > { %299 = vrot.lane.b32.xlu1 %v276_v29, %s1040_s10  ;;  %297 = vrot.lane.b32.xlu0 %v275_v30, %s1040_s10  ;;  %v1267_v29 = vld [vmem:[%s1100_s9 + $0x20] sm:$0x1]  ;;  %v536_v30 = vrot.slane %v1222_v5, 1 }
  0x90   : > { %v506_v18 = vmul.f32 %v1160_v37, %v1267_v29 }
  0x93   : > { %345 = vrot.lane.b32.xlu1 %v326_v38, %s1041_s11  ;;  %343 = vrot.lane.b32.xlu0 %v325_v39, %s1041_s11  ;;  %v210_v38 = vld [vmem:[%s1660_s2 + $0x20] sm:$0xff]  ;;  %v212_v39 = vld [vmem:[%s1660_s2 + $0x30] sm:$0xff] }
  0x94   : > { %v974_v1 = vpack.c.bf16 %v212_v39, %v210_v38  ;;  %v1340_v38 = vmul.f32 %v1290_v40, %v1134_v25  ;;  %v541_v39 = vsel %vm393_vm0, %v539_v27, %v540_v28  ;;  %v431_v27 = vmul.f32 %v1138_v26, %v1293_v42 }
  0x96   : > { %975 = vmatpush1.bf16.msra.mxu0 %v974_v1  ;;  %1009 = vmatpush1.bf16.msra.mxu1 %v974_v1  ;;  %v218_v1 = vld [vmem:[%s1660_s2 + $0x60] sm:$0xff] }
  0x97   : > { %353 = vrot.lane.b32.xlu1 %v330_v53, %s1041_s11  ;;  %351 = vrot.lane.b32.xlu0 %v329_v54, %s1041_s11  ;;  %v537_v53 = vrot.slane %v1250_v17, 1  ;;  %v1305_v54 = vmul.f32 %v1138_v26, %v1267_v29  ;;  %v982_v19 = vpack.c.bf16 %v220_v8, %v218_v1  ;;  %v226_v8 = vld [vmem:[%s1660_s2 + $0xa0] sm:$0xff] }
  0x98   : > { %977 = vmatprep.subr.bf16.mxu0 %v976_v13  ;;  %1002 = vmatprep.subr.bf16.mxu1 %v976_v13  ;;  %v1400_v13 = vpop.permute.xlu0 %624 }
  0x9a   : > { %979 = vmatpush1.bf16.msra.mxu0 %v978_v58  ;;  %1010 = vmatpush1.bf16.msra.mxu1 %v978_v58  ;;  %v532_v58 = vrot.slane %v506_v18, 1  ;;  %v579_v18 = vld [vmem:[%s1100_s9 + $0x38] sm:$0xfc] }
  0x9b   : > { %467 = vrot.lane.b32.xlu1 %v450_v57, %s1040_s10  ;;  %465 = vrot.lane.b32.xlu0 %v447_v61, %s1040_s10  ;;  %v383_v57 = vmul.f32 %v1175_v46, %v1267_v29  ;;  %v1316_v61 = vld [vmem:[%s1100_s9 + $0x30] sm:$0xfc]  ;;  %v402_v46 = vrot.slane %v386_v3, 1  ;;  %v589_v3 = vmul.f32 %v1290_v40, %v1363_v56  ;;  %v222_v29 = vld [vmem:[%s1660_s2 + $0x80] sm:$0xff] }
  0x9d   : > { %v397_v11 = vrot.slane %v383_v57, 1  ;;  %v453_v57 = vrot.slane %v1272_v31, 1  ;;  %v980_v31 = vpack.c.bf16 %v221_v49, %v219_v45  ;;  %v461_v45 = vrot.slane %v431_v27, 1 }
  0x9e   : > { %v1442_v27 = vmul.f32 %v1400_v13, %v1124_v21 }
  0x9f   : > { %475 = vrot.lane.b32.xlu1 %v460_v15, %s1040_s10  ;;  %473 = vrot.lane.b32.xlu0 %v457_v16, %s1040_s10  ;;  %v590_v15 = vmul.f32 %v1290_v40, %v1316_v61  ;;  %v1330_v16 = vsel %vm393_vm0, %v399_v55, %v400_v63  ;;  %v1350_v36 = vsel %vm393_vm0, %v395_v9, %v397_v11  ;;  %v606_v55 = vrot.slane %v1340_v38, 2  ;;  %v232_v38 = vld [vmem:[%s1660_s2 + $0xd0] sm:$0xff] }
  0xa0   : > { %v1366_v9 = vsel %vm393_vm0, %v400_v63, %v402_v46  ;;  %v451_v63 = vrot.slane %v1305_v54, 1  ;;  %v225_v54 = vld [vmem:[%s1660_s2 + $0x98] sm:$0xff]  ;;  %v603_v11 = vrot.slane %v589_v3, 2  ;;  %981 = vmatprep.subr.bf16.mxu0 %v980_v31  ;;  %1003 = vmatprep.subr.bf16.mxu1 %v980_v31  ;;  %v462_v31 = vsel %vm393_vm0, %v456_v62, %v461_v45 }
  0xa1   : > { %v605_v51 = vrot.slane %v590_v15, 2  ;;  %v1405_v15 = vld [vmem:[%s1100_s9 + $0x8] sm:$0xfc]  ;;  %983 = vmatpush1.bf16.msra.mxu0 %v982_v19  ;;  %1011 = vmatpush1.bf16.msra.mxu1 %v982_v19  ;;  %v634_v45 = vmul.f32 %v1400_v13, %v579_v18 }
  0xa2   : > { %v628_v32 = vmul.f32 %v1400_v13, %v1405_v15 }
  0xa3   : > { %548 = vrot.lane.b32.xlu1 %v531_v22, %s1041_s11  ;;  %546 = vrot.lane.b32.xlu0 %v528_v23, %s1041_s11  ;;  %v601_v22 = vrot.slane %v588_v14, 2  ;;  %v432_v23 = vmul.f32 %v1138_v26, %v1323_v10  ;;  %v538_v26 = vsel %vm393_vm0, %v536_v30, %v537_v53  ;;  %v1390_v5 = vsel %vm599_vm1, %v605_v51, %v606_v55  ;;  %v223_v30 = vld [vmem:[%s1660_s2 + $0x88] sm:$0xff] }
  0xa4   : > { %v507_v14 = vmul.f32 %v1160_v37, %v1225_v6  ;;  %v452_v6 = vsel %vm393_vm0, %v446_v47, %v451_v63  ;;  %v984_v49 = vpack.c.bf16 %v225_v54, %v223_v30  ;;  %v1436_v51 = vmul.f32 %v1400_v13, %v1121_v20  ;;  %v235_v10 = vld [vmem:[%s1660_s2 + $0xe8] sm:$0xff] }
  0xa5   : > { %v1371_v60 = vsel %vm599_vm1, %v600_v34, %v601_v22  ;;  %v463_v46 = vrot.slane %v432_v23, 1  ;;  %v1410_v34 = vsel %vm599_vm1, %v601_v22, %v603_v11  ;;  %v224_v22 = vld [vmem:[%s1660_s2 + $0x90] sm:$0xff]  ;;  %v627_v23 = vmul.f32 %v1400_v13, %v1296_v44 }
  0xa6   : > { %v534_v47 = vrot.slane %v507_v14, 1  ;;  %v986_v3 = vpack.c.bf16 %v224_v22, %v222_v29  ;;  %985 = vmatprep.subr.bf16.mxu0 %v984_v49  ;;  %1004 = vmatprep.subr.bf16.mxu1 %v984_v49  ;;  %v654_v41 = vrot.slane %v628_v32, 2  ;;  %v655_v54 = vrot.slane %v1436_v51, 2 }
  0xa7   : > { %556 = vrot.lane.b32.xlu1 %v541_v39, %s1041_s11  ;;  %554 = vrot.lane.b32.xlu0 %v538_v26, %s1041_s11  ;;  %v454_v39 = vsel %vm393_vm0, %v449_v43, %v453_v57  ;;  %v229_v43 = vld [vmem:[%s1660_s2 + $0xb8] sm:$0xff]  ;;  %v1445_v57 = vld [vmem:[%s1100_s9 + $0x50] sm:$0x3]  ;;  %v464_v63 = vsel %vm393_vm0, %v459_v59, %v463_v46  ;;  %v651_v11 = vrot.slane %v627_v23, 2  ;;  %v652_v14 = vrot.slane %v1442_v27, 2 }
  0xa8   : > { %v592_v26 = vmul.f32 %v1290_v40, %v1445_v57  ;;  %v988_v1 = vpack.c.bf16 %v229_v43, %v227_v35  ;;  %v228_v40 = vld [vmem:[%s1660_s2 + $0xb0] sm:$0xff]  ;;  %v233_v59 = vld [vmem:[%s1660_s2 + $0xd8] sm:$0xff]  ;;  %v535_v30 = vsel %vm393_vm0, %v530_v0, %v534_v47  ;;  %v533_v46 = vsel %vm393_vm0, %v527_v2, %v532_v58  ;;  %987 = vmatpush1.bf16.msra.mxu0 %v986_v3  ;;  %v230_v2 = vld [vmem:[%s1660_s2 + $0xc0] sm:$0xff] }
  0xa9   : > { %1012 = vmatpush1.bf16.msra.mxu1 %v986_v3  ;;  %v990_v19 = vpack.c.bf16 %v228_v40, %v226_v8  ;;  %v512_v0 = vmul.f32 %v1160_v37, %v1293_v42  ;;  %v992_v52 = vpack.c.bf16 %v233_v59, %v231_v48  ;;  %v237_v37 = vld [vmem:[%s1660_s2 + $0xf8] sm:$0xff]  ;;  %v656_v42 = vsel %vm599_vm1, %v654_v41, %v655_v54  ;;  %v234_v23 = vld [vmem:[%s1660_s2 + $0xe0] sm:$0xff]  ;;  %v236_v58 = vld [vmem:[%s1660_s2 + $0xf0] sm:$0xff] }
  0xaa   : > { %v608_v62 = vrot.slane %v592_v26, 2  ;;  %989 = vmatprep.subr.bf16.mxu0 %v988_v1  ;;  %1005 = vmatprep.subr.bf16.mxu1 %v988_v1  ;;  %v1512_v49 = vmul.f32 %v1400_v13, %v1131_v24  ;;  %v633_v29 = vmul.f32 %v1400_v13, %v1316_v61  ;;  %v994_v22 = vpack.c.bf16 %v232_v38, %v230_v2 }
  0xab   : > { %471 = vrot.lane.b32.xlu1 %v454_v39, %s1040_s10  ;;  %469 = vrot.lane.b32.xlu0 %v452_v6, %s1040_s10  ;;  %v1507_v6 = vpop.permute.xlu1 %705  ;;  %v544_v32 = vrot.slane %v513_v50, 1  ;;  %v542_v35 = vrot.slane %v512_v0, 1  ;;  %v1518_v43 = vmul.f32 %v1400_v13, %v1134_v25  ;;  %v996_v47 = vpack.c.bf16 %v237_v37, %v235_v10  ;;  %v581_v37 = vld [vmem:[%s1100_s9 + $0x58] sm:$0x3] }
  0xac   : > { %v1481_v39 = vsel %vm599_vm1, %v606_v55, %v608_v62  ;;  %v653_v55 = vsel %vm599_vm1, %v651_v11, %v652_v14  ;;  %991 = vmatpush1.bf16.msra.mxu0 %v990_v19  ;;  %v709_v3 = vmul.f32 %v1507_v6, %v1405_v15  ;;  %v1532_v26 = vmul.f32 %v1507_v6, %v1121_v20 }
  0xad   : > { %1013 = vmatpush1.bf16.msra.mxu1 %v990_v19  ;;  %993 = vmatprep.subr.bf16.mxu0 %v992_v52  ;;  %v1042_v1 = vmov 0.0   ;;  %v664_v8 = vrot.slane %v634_v45, 2  ;;  %v665_v40 = vrot.slane %v1512_v49, 2  ;;  %v998_v15 = vpack.c.bf16 %v236_v58, %v234_v23 }
  0xae   : > { %1006 = vmatprep.subr.bf16.mxu1 %v992_v52  ;;  %855 = vmatprep.mubr.f32.mxu0 %v1042_v1  ;;  %v545_v20 = vsel %vm393_vm0, %v540_v28, %v544_v32  ;;  %v661_v41 = vrot.slane %v633_v29, 2  ;;  %v662_v48 = vrot.slane %v1518_v43, 2  ;;  %v735_v59 = vrot.slane %v709_v3, 2 }
  0xaf   : > { %479 = vrot.lane.b32.xlu1 %v464_v63, %s1040_s10  ;;  %477 = vrot.lane.b32.xlu0 %v462_v31, %s1040_s10  ;;  %v708_v63 = vmul.f32 %v1507_v6, %v1296_v44  ;;  %v1538_v31 = vmul.f32 %v1507_v6, %v1124_v21  ;;  %v543_v44 = vsel %vm393_vm0, %v537_v53, %v542_v35  ;;  %v736_v62 = vrot.slane %v1532_v26, 2 }
  0xb0   : > { %867 = vmatprep.mubr.f32.mxu1 %v1042_v1  ;;  %995 = vmatpush1.bf16.msra.mxu0 %v994_v22  ;;  %v715_v17 = vmul.f32 %v1507_v6, %v579_v18  ;;  %v717_v53 = vmul.f32 %v1507_v6, %v1131_v24  ;;  %v663_v11 = vsel %vm599_vm1, %v661_v41, %v662_v48  ;;  %v577_v18 = vld [vmem:[%s1100_s9 + $0x28] sm:$0x3] }
  0xb1   : > { %1014 = vmatpush1.bf16.msra.mxu1 %v994_v22  ;;  %997 = vmatprep.subr.bf16.mxu0 %v996_v47  ;;  %v732_v4 = vrot.slane %v708_v63, 2  ;;  %v733_v28 = vrot.slane %v1538_v31, 2  ;;  %v716_v19 = vmul.f32 %v1507_v6, %v1134_v25  ;;  %v737_v24 = vsel %vm599_vm1, %v735_v59, %v736_v62 }
  0xb2   : > { %1007 = vmatprep.subr.bf16.mxu1 %v996_v47  ;;  %v745_v0 = vrot.slane %v715_v17, 2  ;;  %v746_v52 = vrot.slane %v717_v53, 2  ;;  %v632_v10 = vmul.f32 %v1400_v13, %v577_v18  ;;  %v637_v22 = vmul.f32 %v1400_v13, %v1445_v57 }
  0xb3   : > { %552 = vrot.lane.b32.xlu1 %v535_v30, %s1041_s11  ;;  %550 = vrot.lane.b32.xlu0 %v533_v46, %s1041_s11  ;;  %v666_v30 = vsel %vm599_vm1, %v664_v8, %v665_v40  ;;  %v714_v46 = vmul.f32 %v1507_v6, %v1316_v61  ;;  %v734_v50 = vsel %vm599_vm1, %v732_v4, %v733_v28  ;;  %v743_v38 = vrot.slane %v716_v19, 2 }
  0xb4   : > { %999 = vmatpush1.bf16.msra.mxu0 %v998_v15  ;;  %v631_v61 = vmul.f32 %v1400_v13, %v1363_v56  ;;  %v659_v49 = vrot.slane %v632_v10, 2  ;;  %v713_v32 = vmul.f32 %v1507_v6, %v577_v18  ;;  %v712_v35 = vmul.f32 %v1507_v6, %v1363_v56 }
  0xb5   : > { %1015 = vmatpush1.bf16.msra.mxu1 %v998_v15  ;;  %v742_v2 = vrot.slane %v714_v46, 2  ;;  %v667_v58 = vrot.slane %v637_v22, 2  ;;  %v719_v3 = vmul.f32 %v1507_v6, %v581_v37  ;;  %v956_v15 = vld [vmem:[%s1659_s1] ss:$0 sm:$0xff] }
  0xb6   : > { %v657_v29 = vrot.slane %v631_v61, 2  ;;  %v660_v43 = vsel %vm599_vm1, %v655_v54, %v659_v49  ;;  %v738_v51 = vrot.slane %v712_v35, 2  ;;  %v718_v54 = vmul.f32 %v1507_v6, %v1445_v57 }
  0xb7   : > { %673 = vrot.lane.b32.xlu1 %v656_v42, %s1040_s10  ;;  %671 = vrot.lane.b32.xlu0 %v653_v55, %s1040_s10  ;;  %v747_v42 = vsel %vm599_vm1, %v745_v0, %v746_v52  ;;  %v638_v55 = vmul.f32 %v1400_v13, %v581_v37  ;;  %v744_v45 = vsel %vm599_vm1, %v742_v2, %v743_v38  ;;  %v740_v13 = vrot.slane %v713_v32, 2 }
  0xb8   : > { %v658_v47 = vsel %vm599_vm1, %v652_v14, %v657_v29  ;;  %v668_v56 = vsel %vm599_vm1, %v662_v48, %v667_v58  ;;  %v739_v14 = vsel %vm599_vm1, %v733_v28, %v738_v51  ;;  %v750_v63 = vrot.slane %v719_v3, 2 }
  0xb9   : > { %v669_v23 = vrot.slane %v638_v55, 2  ;;  %v741_v27 = vsel %vm599_vm1, %v736_v62, %v740_v13  ;;  %v748_v31 = vrot.slane %v718_v54, 2  ;;  %v254_v62 = vmul.f32 %v956_v15, %v1109_v12 }
  0xba   : > { %v751_v8 = vsel %vm599_vm1, %v746_v52, %v750_v63  ;;  %v253_v12 = vmul.f32 %v956_v15, %v1124_v21  ;;  %v255_v37 = vmul.f32 %v956_v15, %v1134_v25 }
  0xbb   : > { %560 = vrot.lane.b32.xlu1 %v545_v20, %s1041_s11  ;;  %558 = vrot.lane.b32.xlu0 %v543_v44, %s1041_s11  ;;  %v670_v26 = vsel %vm599_vm1, %v665_v40, %v669_v23  ;;  %v749_v40 = vsel %vm599_vm1, %v743_v38, %v748_v31  ;;  %v252_v20 = vmul.f32 %v956_v15, %v1104_v7 }
  0xbf   : > { %681 = vrot.lane.b32.xlu1 %v666_v30, %s1040_s10  ;;  %679 = vrot.lane.b32.xlu0 %v663_v11, %s1040_s10 }
  0xc3   : > { %754 = vrot.lane.b32.xlu1 %v737_v24, %s1041_s11  ;;  %752 = vrot.lane.b32.xlu0 %v734_v50, %s1041_s11 }
  0xc7   : > { %762 = vrot.lane.b32.xlu1 %v747_v42, %s1041_s11  ;;  %760 = vrot.lane.b32.xlu0 %v744_v45, %s1041_s11 }
  0xcb   : > { %677 = vrot.lane.b32.xlu1 %v660_v43, %s1040_s10  ;;  %675 = vrot.lane.b32.xlu0 %v658_v47, %s1040_s10 }
  0xcf   : > { %685 = vrot.lane.b32.xlu1 %v670_v26, %s1040_s10  ;;  %683 = vrot.lane.b32.xlu0 %v668_v56, %s1040_s10 }
  0xd3   : > { %758 = vrot.lane.b32.xlu1 %v741_v27, %s1041_s11  ;;  %756 = vrot.lane.b32.xlu0 %v739_v14, %s1041_s11 }
  0xd7   : > { %766 = vrot.lane.b32.xlu1 %v751_v8, %s1041_s11  ;;  %764 = vrot.lane.b32.xlu0 %v749_v40, %s1041_s11 }
  0xed   : > { %v288_v57 = vpop.permute.xlu1 %287  ;;  %v286_v6 = vpop.permute.xlu0 %285 }
  0xee   : > { %v302_v48 = vsel %vm301_vm2, %v286_v6, %v288_v57 }
  0xef   : > { %v310_v59 = vadd.f32 %v302_v48, %v252_v20 }
  0xf1   : > { %v296_v44 = vpop.permute.xlu1 %295  ;;  %v294_v41 = vpop.permute.xlu0 %293 }
  0xf2   : > { %v304_v17 = vsel %vm301_vm2, %v294_v41, %v296_v44 }
  0xf3   : > { %v312_v11 = vadd.f32 %v304_v17, %v254_v62 }
  0xf5   : > { %v342_v4 = vpop.permute.xlu1 %341  ;;  %v340_v28 = vpop.permute.xlu0 %339 }
  0xf6   : > { %v356_v53 = vsel %vm355_vm3, %v340_v28, %v342_v4 }
  0xf7   : > { %v364_v30 = vadd.f32 %v356_v53, %v310_v59 }
  0xf9   : > { %v350_v46 = vpop.permute.xlu1 %349  ;;  %v348_v19 = vpop.permute.xlu0 %347  ;;  %v408_v7 = vadd.f32 %v1277_v33, %v364_v30 }
  0xfa   : > { %v358_v18 = vsel %vm355_vm3, %v348_v19, %v350_v46 }
  0xfb   : > { %v366_v24 = vadd.f32 %v358_v18, %v312_v11 }
  0xfd   : > { %v292_v50 = vpop.permute.xlu1 %291  ;;  %v290_v0 = vpop.permute.xlu0 %289  ;;  %v410_v52 = vadd.f32 %v1330_v16, %v366_v24 }
  0xfe   : > { %v303_v10 = vsel %vm301_vm2, %v290_v0, %v292_v50 }
  0xff   : > { %v311_v61 = vadd.f32 %v303_v10, %v253_v12 }
 0x101   : > { %v300_v2 = vpop.permute.xlu1 %299  ;;  %v298_v38 = vpop.permute.xlu0 %297 }
 0x102   : > { %v305_v33 = vsel %vm301_vm2, %v298_v38, %v300_v2 }
 0x103   : > { %v313_v29 = vadd.f32 %v305_v33, %v255_v37 }
 0x105   : > { %v346_v42 = vpop.permute.xlu1 %345  ;;  %v344_v55 = vpop.permute.xlu0 %343 }
 0x106   : > { %v357_v45 = vsel %vm355_vm3, %v344_v55, %v346_v42 }
 0x107   : > { %v365_v49 = vadd.f32 %v357_v45, %v311_v61 }
 0x109   : > { %v354_v22 = vpop.permute.xlu1 %353  ;;  %v352_v32 = vpop.permute.xlu0 %351  ;;  %v409_v16 = vadd.f32 %v1350_v36, %v365_v49 }
 0x10a   : > { %v359_v21 = vsel %vm355_vm3, %v352_v32, %v354_v22 }
 0x10b   : > { %v367_v35 = vadd.f32 %v359_v21, %v313_v29 }
 0x10d   : > { %v468_v43 = vpop.permute.xlu1 %467  ;;  %v466_v47 = vpop.permute.xlu0 %465  ;;  %v411_v23 = vadd.f32 %v1366_v9, %v367_v35 }
 0x10e   : > { %v481_v13 = vsel %vm301_vm2, %v466_v47, %v468_v43 }
 0x10f   : > { %v489_v3 = vadd.f32 %v481_v13, %v408_v7  ;;  %v781_v13 = vlaneseq }
 0x111   : > { %v476_v25 = vpop.permute.xlu1 %475  ;;  %v474_v58 = vpop.permute.xlu0 %473 }
 0x112   : > { %v483_v51 = vsel %vm301_vm2, %v474_v58, %v476_v25 }
 0x113   : > { %v491_v36 = vadd.f32 %v483_v51, %v410_v52 }
 0x115   : > { %v549_v26 = vpop.permute.xlu1 %548  ;;  %v547_v56 = vpop.permute.xlu0 %546 }
 0x116   : > { %v562_v54 = vsel %vm355_vm3, %v547_v56, %v549_v26  ;;  %v238_v56 = vld [vmem:[%s1661_s3] sm:$0x3] }
 0x117   : > { %v570_v27 = vadd.f32 %v562_v54, %v489_v3  ;;  %v782_v3 = vshrl.u32 %v781_v13, 7 }
 0x119   : > { %v557_v14 = vpop.permute.xlu1 %556  ;;  %v555_v63 = vpop.permute.xlu0 %554  ;;  %v614_v31 = vadd.f32 %v1371_v60, %v570_v27  ;;  %v783_v26 = vsub.s32 0, %v782_v3  ;;  %v787_v51 = vsub.s32 1, %v782_v3 }
 0x11a   : > { %v564_v8 = vsel %vm355_vm3, %v555_v63, %v557_v14 }
 0x11b   : > { %v572_v9 = vadd.f32 %v564_v8, %v491_v36  ;;  %v784_v54 = vrot.slane %v238_v56, %v783_v26  ;;  %v788_v27 = vrot.slane %v238_v56, %v787_v51 }
 0x11d   : > { %v472_v40 = vpop.permute.xlu1 %471  ;;  %v470_v57 = vpop.permute.xlu0 %469  ;;  %v616_v6 = vadd.f32 %v1390_v5, %v572_v9 }
 0x11e   : > { %v482_v44 = vsel %vm301_vm2, %v470_v57, %v472_v40 }
 0x11f   : > { %v490_v41 = vadd.f32 %v482_v44, %v409_v16 }
 0x121   : > { %v480_v15 = vpop.permute.xlu1 %479  ;;  %v478_v20 = vpop.permute.xlu0 %477 }
 0x122   : > { %v484_v53 = vsel %vm301_vm2, %v478_v20, %v480_v15 }
 0x123   : > { %v492_v30 = vadd.f32 %v484_v53, %v411_v23 }
 0x125   : > { %v553_v48 = vpop.permute.xlu1 %552  ;;  %v551_v59 = vpop.permute.xlu0 %550 }
 0x126   : > { %v563_v62 = vsel %vm355_vm3, %v551_v59, %v553_v48 }
 0x127   : > { %v571_v4 = vadd.f32 %v563_v62, %v490_v41 }
 0x129   : > { %v674_v28 = vpop.permute.xlu1 %673  ;;  %v672_v17 = vpop.permute.xlu0 %671  ;;  %v615_v60 = vadd.f32 %v1410_v34, %v571_v4 }
 0x12a   : > { %v687_v50 = vsel %vm301_vm2, %v672_v17, %v674_v28 }
 0x12b   : > { %v695_v0 = vadd.f32 %v687_v50, %v614_v31 }
 0x12d   : > { %v561_v11 = vpop.permute.xlu1 %560  ;;  %v559_v46 = vpop.permute.xlu0 %558 }
 0x12e   : > { %v565_v5 = vsel %vm355_vm3, %v559_v46, %v561_v11 }
 0x12f   : > { %v573_v19 = vadd.f32 %v565_v5, %v492_v30 }
 0x131   : > { %v682_v7 = vpop.permute.xlu1 %681  ;;  %v680_v18 = vpop.permute.xlu0 %679  ;;  %v617_v24 = vadd.f32 %v1481_v39, %v573_v19 }
 0x132   : > { %v689_v2 = vsel %vm301_vm2, %v680_v18, %v682_v7 }
 0x133   : > { %v697_v10 = vadd.f32 %v689_v2, %v616_v6 }
 0x135   : > { %v755_v52 = vpop.permute.xlu1 %754  ;;  %v753_v12 = vpop.permute.xlu0 %752 }
 0x136   : > { %v768_v34 = vsel %vm355_vm3, %v753_v12, %v755_v52 }
 0x137   : > { %v776_v38 = vadd.f32 %v768_v34, %v695_v0 }
 0x139   : > { %v763_v61 = vpop.permute.xlu1 %762  ;;  %v761_v37 = vpop.permute.xlu0 %760  ;;  %856 = vmatmul.mubr.f32.vlgmr.msra.gmra.mrb[0].mxu0 %v776_v38 }
 0x13a   : > { %v770_v42 = vsel %vm355_vm3, %v761_v37, %v763_v61  ;;  %861 = vmatprep.mubr.f32.mxu0 %v1042_v1 }
 0x13b   : > { %v778_v55 = vadd.f32 %v770_v42, %v697_v10 }
 0x13d   : > { %v678_v39 = vpop.permute.xlu1 %677  ;;  %868 = vmatmul.mubr.f32.vlgmr.msra.gmra.mrb[0].mxu1 %v778_v55  ;;  %v676_v33 = vpop.permute.xlu0 %675 }
 0x13e   : > { %873 = vmatprep.mubr.f32.mxu1 %v1042_v1  ;;  %v688_v29 = vsel %vm301_vm2, %v676_v33, %v678_v39 }
 0x13f   : > { %v696_v22 = vadd.f32 %v688_v29, %v615_v60 }
 0x141   : > { %v686_v45 = vpop.permute.xlu1 %685  ;;  %v684_v49 = vpop.permute.xlu0 %683 }
 0x142   : > { %v690_v21 = vsel %vm301_vm2, %v684_v49, %v686_v45 }
 0x143   : > { %v698_v47 = vadd.f32 %v690_v21, %v617_v24 }
 0x145   : > { %v759_v32 = vpop.permute.xlu1 %758  ;;  %v757_v16 = vpop.permute.xlu0 %756 }
 0x146   : > { %v769_v35 = vsel %vm355_vm3, %v757_v16, %v759_v32 }
 0x147   : > { %v777_v43 = vadd.f32 %v769_v35, %v696_v22 }
 0x149   : > { %v767_v23 = vpop.permute.xlu1 %766  ;;  %v765_v25 = vpop.permute.xlu0 %764  ;;  %862 = vmatmul.mubr.f32.gmra.mrb[2].mxu0 %v777_v43 }
 0x14a   : > { %v771_v58 = vsel %vm355_vm3, %v765_v25, %v767_v23 }
 0x14b   : > { %v779_v1 = vadd.f32 %v771_v58, %v698_v47 }
 0x14d   : > { %874 = vmatmul.mubr.f32.gmra.mrb[2].mxu1 %v779_v1 }
 0x20c   : > { %v857_v36 = vpop.f32.mrb[0].mxu0 }
 0x20d   : > { %v858_v14 = vadd.f32 %v857_v36, %v784_v54  ;;  %v859_v63 = vpop.f32.mrb[1].mxu0 }
 0x20e   : > { %v860_v31 = vadd.f32 %v859_v63, %v788_v27 }
 0x20f   : > { %880 = vst [vmem:[%s204_s22] sm:$0xff] %v858_v14 }
 0x210   : > { %881 = vst [vmem:[%s204_s22 + $0x8] sm:$0xff] %v860_v31  ;;  %v869_v8 = vpop.f32.mrb[0].mxu1 }
 0x211   : > { %v870_v9 = vadd.f32 %v869_v8, %v784_v54  ;;  %v871_v40 = vpop.f32.mrb[1].mxu1 }
 0x212   : > { %v872_v57 = vadd.f32 %v871_v40, %v788_v27 }
 0x213   : > { %884 = vst [vmem:[%s204_s22 + $0x20] sm:$0xff] %v870_v9 }
 0x214   : > { %885 = vst [vmem:[%s204_s22 + $0x28] sm:$0xff] %v872_v57 }
 0x21c   : > { %v863_v6 = vpop.f32.mrb[2].mxu0 }
 0x21d   : > { %v864_v15 = vadd.f32 %v863_v6, %v784_v54  ;;  %v865_v20 = vpop.f32.mrb[3].mxu0 }
 0x21e   : > { %v866_v44 = vadd.f32 %v865_v20, %v788_v27 }
 0x21f   : > { %882 = vst [vmem:[%s204_s22 + $0x10] sm:$0xff] %v864_v15 }
 0x220   : > { %883 = vst [vmem:[%s204_s22 + $0x18] sm:$0xff] %v866_v44  ;;  %v875_v41 = vpop.f32.mrb[2].mxu1 }
 0x221   : > { %v876_v48 = vadd.f32 %v875_v41, %v784_v54  ;;  %v877_v59 = vpop.f32.mrb[3].mxu1 }
 0x222   : > { %v878_v62 = vadd.f32 %v877_v59, %v788_v27 }
 0x223   : > { %886 = vst [vmem:[%s204_s22 + $0x30] sm:$0xff] %v876_v48 }
 0x224   : > { %887 = vst [vmem:[%s204_s22 + $0x38] sm:$0xff] %v878_v62 }
 0x225 PF: > { %s14_s15 = sadd.s32 1, %s1036_s15  }
 0x226   : > { %p11_p4 = scmp.ge.s32.totalorder %s14_s15, 4  }
 0x228   :  { %13 = sbr.rel (!%p11_p4) target bundleno = 1 (0x1), region = 66 }

</bundles_post_ra>
